<compile_context>
chip_gen: v6e
topology: v6e:2x2x1
jax: 0.10.0
libtpu: 0.0.40
codegen_flags: <defaults>
</compile_context>

<pallas_src>
import math
import functools

import jax
import jax.numpy as jnp
from jax.experimental import pallas as pl
from jax.experimental.pallas import tpu as pltpu


# ---------------------------------------------------------------------------
# Shared math helpers (kernel + pure-JAX reference)
# ---------------------------------------------------------------------------

def _layernorm(x, gamma, beta, eps=1e-5):
    mu = jnp.mean(x, axis=-1, keepdims=True)
    var = jnp.mean((x - mu) ** 2, axis=-1, keepdims=True)
    return (x - mu) * jax.lax.rsqrt(var + eps) * gamma + beta


def _positional_encoding(S, E):
    position = jnp.arange(S, dtype=jnp.float32)[:, None]
    div_term = jnp.exp(jnp.arange(0, E, 2, dtype=jnp.float32) * (-math.log(10000.0) / E))
    angles = position * div_term                        # (S, ceil(E/2))
    pe = jnp.zeros((S, E), jnp.float32)
    pe = pe.at[:, 0::2].set(jnp.sin(angles))
    pe = pe.at[:, 1::2].set(jnp.cos(angles)[:, : E // 2])   # handles odd E too
    return pe


# ---------------------------------------------------------------------------
# Fused kernel: embed (l==0) + encoder layer l + pool/logits (l==last)
# ---------------------------------------------------------------------------

def _mytrans_kernel(src_ref, pe_ref, we_ref,
                    wq_ref, bq_ref, wk_ref, bk_ref, wv_ref, bv_ref,
                    wo_ref, bo_ref, w1_ref, b1_ref, w2_ref, b2_ref,
                    g1_ref, bt1_ref, g2_ref, bt2_ref,
                    wl_ref, bl_ref, out_ref, z_ref,
                    *, n_heads, head_dim, batch_block, seq, mm_dtype):
    f32 = jnp.float32
    l = pl.program_id(1)
    n_layers = pl.num_programs(1)
    Bb, S, D, H = batch_block, seq, head_dim, n_heads
    E = H * D
    inv_sqrt_d = 1.0 / math.sqrt(D)

    # ---- layer 0 only: embed (sqrt(E) scale folded into we) + pos. encoding --
    @pl.when(l == 0)
    def _():
        z0 = jnp.dot(src_ref[...], we_ref[...], preferred_element_type=f32)  # (Bb*S, E)
        z_ref[...] = (z0.reshape(Bb, S, E) + pe_ref[...][None]).reshape(Bb * S, E)

    z = z_ref[...]                                     # (Bb*S, E) f32, VMEM-resident carry
    zl = z.astype(mm_dtype)

    # ---- fused full-width Q/K/V projections (lane-dense, N = E) --------------
    q = jnp.dot(zl, wq_ref[0], preferred_element_type=f32) + bq_ref[0]
    k = jnp.dot(zl, wk_ref[0], preferred_element_type=f32) + bk_ref[0]
    v = jnp.dot(zl, wv_ref[0], preferred_element_type=f32) + bv_ref[0]
    q3 = q.reshape(Bb, S, E).astype(mm_dtype)
    k3 = k.reshape(Bb, S, E).astype(mm_dtype)
    v3 = v.reshape(Bb, S, E).astype(mm_dtype)

    # ---- per-head scaled dot-product attention (only the S x S work) ---------
    heads = []
    for h in range(H):                                 # static unroll over heads
        sl = slice(h * D, (h + 1) * D)
        s = jnp.einsum('bqd,bkd->bqk', q3[:, :, sl], k3[:, :, sl],
                       preferred_element_type=f32) * inv_sqrt_d      # (Bb, S, S)
        s = s - jnp.max(s, axis=-1, keepdims=True)
        p = jnp.exp(s)
        p = p * pl.reciprocal(jnp.sum(p, axis=-1, keepdims=True), approx=True)
        heads.append(jnp.einsum('bqk,bkd->bqd', p.astype(mm_dtype), v3[:, :, sl],
                                preferred_element_type=f32))          # (Bb, S, D)
    o = jnp.concatenate(heads, axis=-1).reshape(Bb * S, E)            # concat heads
    attn = jnp.dot(o.astype(mm_dtype), wo_ref[0],
                   preferred_element_type=f32) + bo_ref[0]             # single out-proj

    z = _layernorm(z + attn, g1_ref[0], bt1_ref[0])                    # f32 LN/residual

    # ---- feed-forward (relu), full-width matmuls ------------------------------
    h1 = jnp.dot(z.astype(mm_dtype), w1_ref[0], preferred_element_type=f32) + b1_ref[0]
    h1 = jnp.maximum(h1, 0.0)
    h2 = jnp.dot(h1.astype(mm_dtype), w2_ref[0], preferred_element_type=f32) + b2_ref[0]
    z = _layernorm(z + h2, g2_ref[0], bt2_ref[0])
    z_ref[...] = z

    # ---- last layer only: max over seq + to_logits (lane-dense padded store) --
    @pl.when(l == n_layers - 1)
    def _():
        pooled = jnp.max(z.reshape(Bb, S, E), axis=1)                  # (Bb, E)
        out_ref[...] = jnp.dot(pooled.astype(mm_dtype), wl_ref[...],
                               preferred_element_type=f32) + bl_ref[...]


# ---------------------------------------------------------------------------
# Wrapper: host-side weight prep + one pallas_call with grid (batch, layers)
# ---------------------------------------------------------------------------

def mytrans_forward(src, params, *, n_heads, mm_dtype=jnp.bfloat16, batch_block=None):
    B, S, T = src.shape
    E = params["we"].shape[0]
    layers = params["layers"]
    L = len(layers)
    P = params["wl"].shape[0]
    n_hid = layers[0]["w1"].shape[0]
    assert E % n_heads == 0
    D = E // n_heads
    P_pad = ((P + 127) // 128) * 128                   # lane-dense logits store

    # Default: whole batch per block.  On v7x set batch_block = B//2 (when the
    # resulting (batch_block, P_pad) / (batch_block*S, ...) blocks stay
    # (8,128)-friendly) to shard the parallel batch axis across both TensorCores.
    if batch_block is None:
        batch_block = B
    assert B % batch_block == 0
    nbb = B // batch_block
    BS = batch_block * S

    scale = math.sqrt(E)
    # Fold sqrt(E) into the embed weight, and the scaled embed bias into the PE.
    we_t = (params["we"].T * scale).astype(mm_dtype)                             # (T, E)
    pe2 = _positional_encoding(S, E) + params["be"].astype(jnp.float32) * scale  # (S, E)

    def stack(fn, dtype):
        return jnp.stack([fn(lp) for lp in layers], axis=0).astype(dtype)

    wq = stack(lambda lp: lp["wqkv"][0 * E:1 * E, :].T, mm_dtype)      # (L, E, E)
    wk = stack(lambda lp: lp["wqkv"][1 * E:2 * E, :].T, mm_dtype)
    wv = stack(lambda lp: lp["wqkv"][2 * E:3 * E, :].T, mm_dtype)
    bq = stack(lambda lp: lp["bqkv"][:, 0 * E:1 * E], jnp.float32)     # (L, 1, E)
    bk = stack(lambda lp: lp["bqkv"][:, 1 * E:2 * E], jnp.float32)
    bv = stack(lambda lp: lp["bqkv"][:, 2 * E:3 * E], jnp.float32)
    wo = stack(lambda lp: lp["wo"].T, mm_dtype)                        # (L, E, E)
    bo = stack(lambda lp: lp["bo"], jnp.float32)                       # (L, 1, E)
    w1 = stack(lambda lp: lp["w1"].T, mm_dtype)                        # (L, E, n_hid)
    b1 = stack(lambda lp: lp["b1"], jnp.float32)                       # (L, 1, n_hid)
    w2 = stack(lambda lp: lp["w2"].T, mm_dtype)                        # (L, n_hid, E)
    b2 = stack(lambda lp: lp["b2"], jnp.float32)                       # (L, 1, E)
    g1 = stack(lambda lp: lp["g1"], jnp.float32)
    bt1 = stack(lambda lp: lp["bt1"], jnp.float32)
    g2 = stack(lambda lp: lp["g2"], jnp.float32)
    bt2 = stack(lambda lp: lp["bt2"], jnp.float32)

    wl_t = jnp.zeros((E, P_pad), mm_dtype).at[:, :P].set(params["wl"].T.astype(mm_dtype))
    bl = jnp.zeros((1, P_pad), jnp.float32).at[:, :P].set(params["bl"].astype(jnp.float32))

    kernel = functools.partial(
        _mytrans_kernel, n_heads=n_heads, head_dim=D,
        batch_block=batch_block, seq=S, mm_dtype=mm_dtype)

    lay = lambda last2: pl.BlockSpec((1,) + last2, lambda b, l: (l, 0, 0))  # streamed per layer
    fixed = lambda shp: pl.BlockSpec(shp, lambda b, l: (0, 0))              # resident

    grid_spec = pltpu.PrefetchScalarGridSpec(
        num_scalar_prefetch=0,
        grid=(nbb, L),                                     # layers innermost (z carry)
        in_specs=[
            pl.BlockSpec((BS, T), lambda b, l: (b, 0)),    # src (bf16, batch-blocked)
            fixed((S, E)),                                 # pos. encoding (+ scaled bias)
            fixed((T, E)),                                 # embed weight (scale folded)
            lay((E, E)), lay((1, E)),                      # wq, bq
            lay((E, E)), lay((1, E)),                      # wk, bk
            lay((E, E)), lay((1, E)),                      # wv, bv
            lay((E, E)), lay((1, E)),                      # wo, bo
            lay((E, n_hid)), lay((1, n_hid)),              # w1, b1
            lay((n_hid, E)), lay((1, E)),                  # w2, b2
            lay((1, E)), lay((1, E)),                      # norm1 gamma, beta
            lay((1, E)), lay((1, E)),                      # norm2 gamma, beta
            fixed((E, P_pad)),                             # to_logits weight (padded)
            fixed((1, P_pad)),                             # to_logits bias (padded)
        ],
        out_specs=pl.BlockSpec((batch_block, P_pad), lambda b, l: (b, 0)),
        scratch_shapes=[pltpu.VMEM((BS, E), jnp.float32)],  # activation carried over layers
    )

    out_pad = pl.pallas_call(
        kernel,
        out_shape=jax.ShapeDtypeStruct((B, P_pad), jnp.float32),
        grid_spec=grid_spec,
        compiler_params=pltpu.CompilerParams(
            dimension_semantics=("parallel", "arbitrary"),
            vmem_limit_bytes=32 * 1024 * 1024),
    )(src.reshape(B * S, T).astype(mm_dtype), pe2, we_t,
      wq, bq, wk, bk, wv, bv, wo, bo,
      w1, b1, w2, b2, g1, bt1, g2, bt2, wl_t, bl)

    return out_pad[:, :P]


# ---------------------------------------------------------------------------
# Pure-JAX f32 reference (matches PyTorch MyTrans eval-mode forward)
# ---------------------------------------------------------------------------

def reference_forward(src, params, *, n_heads):
    B, S, T = src.shape
    E = params["we"].shape[0]
    D = E // n_heads
    pe = _positional_encoding(S, E)
    z = (src @ params["we"].T + params["be"]) * math.sqrt(E) + pe[None]  # (B, S, E)
    for lp in params["layers"]:
        x = z
        qkv = x @ lp["wqkv"].T + lp["bqkv"]
        q, k, v = qkv[..., :E], qkv[..., E:2 * E], qkv[..., 2 * E:]

        def split(t):
            return t.reshape(B, S, n_heads, D).transpose(0, 2, 1, 3)     # (B, H, S, D)

        qh, kh, vh = split(q), split(k), split(v)
        s = jnp.einsum('bhqd,bhkd->bhqk', qh, kh) / math.sqrt(D)
        p = jax.nn.softmax(s, axis=-1)
        o = jnp.einsum('bhqk,bhkd->bhqd', p, vh).transpose(0, 2, 1, 3).reshape(B, S, E)
        attn = o @ lp["wo"].T + lp["bo"]
        x = _layernorm(x + attn, lp["g1"], lp["bt1"])
        h1 = jnp.maximum(x @ lp["w1"].T + lp["b1"], 0.0)
        h2 = h1 @ lp["w2"].T + lp["b2"]
        z = _layernorm(x + h2, lp["g2"], lp["bt2"])
    pooled = z.max(axis=1)
    return pooled @ params["wl"].T + params["bl"]


# ---------------------------------------------------------------------------
# Deterministic parameter construction (mirrors module __init__ shapes)
# ---------------------------------------------------------------------------

def init_params(key, n_tokens, embed_dim, n_heads, n_hid, n_eclayers, pred_dim):
    E = embed_dim
    keys = jax.random.split(key, 3 + n_eclayers)

    def u(k, shape, scale):
        return jax.random.uniform(k, shape, jnp.float32, -scale, scale)

    params = {
        "we": u(keys[0], (E, n_tokens), 0.01),                       # embedder.weight
        "be": u(keys[1], (1, E), 1.0 / math.sqrt(n_tokens)),         # embedder.bias
        "wl": u(keys[2], (pred_dim, E), 0.01),                       # to_logits.weight
        "bl": jnp.zeros((1, pred_dim), jnp.float32),                 # to_logits.bias (zeroed)
        "layers": [],
    }
    for li in range(n_eclayers):
        lk = jax.random.split(keys[3 + li], 8)
        s_e, s_h = 1.0 / math.sqrt(E), 1.0 / math.sqrt(n_hid)
        params["layers"].append({
            "wqkv": u(lk[0], (3 * E, E), s_e),      # self_attn.in_proj_weight
            "bqkv": u(lk[1], (1, 3 * E), s_e),      # self_attn.in_proj_bias
            "wo":   u(lk[2], (E, E), s_e),          # self_attn.out_proj.weight
            "bo":   u(lk[3], (1, E), s_e),          # self_attn.out_proj.bias
            "w1":   u(lk[4], (n_hid, E), s_e),      # linear1.weight
            "b1":   u(lk[5], (1, n_hid), s_e),      # linear1.bias
            "w2":   u(lk[6], (E, n_hid), s_h),      # linear2.weight
            "b2":   u(lk[7], (1, E), s_h),          # linear2.bias
            "g1":  jnp.ones((1, E), jnp.float32),   # norm1 weight
            "bt1": jnp.zeros((1, E), jnp.float32),  # norm1 bias
            "g2":  jnp.ones((1, E), jnp.float32),   # norm2 weight
            "bt2": jnp.zeros((1, E), jnp.float32),  # norm2 bias
        })
    return params


if __name__ == "__main__":
    B, S = 2, 8
    n_tokens, embed_dim, n_heads = 16, 32, 4
    n_hid, n_eclayers, pred_dim = 64, 2, 3

    key = jax.random.PRNGKey(0)
    k_src, k_par = jax.random.split(key)
    # src mirrors PyTorch input [batch, seq, n_tokens] (permuted to [S,B,T] in torch forward)
    src = jax.random.normal(k_src, (B, S, n_tokens), jnp.float32)
    params = init_params(k_par, n_tokens, embed_dim, n_heads, n_hid, n_eclayers, pred_dim)

    out = mytrans_forward(src, params, n_heads=n_heads)
    jax.block_until_ready(out)
    assert out.shape == (B, pred_dim) and out.dtype == jnp.float32

    ref = reference_forward(src, params, n_heads=n_heads)
    err = float(jnp.max(jnp.abs(out - ref)))
    assert err < 3e-2, f"max abs err vs f32 reference = {err}"
    print("KERNEL_OK")
</pallas_src>

<mosaic_0001>
module attributes {stable_mosaic.version = 11 : i64} {
  func.func @_mytrans_kernel(%arg0: i32, %arg1: i32, %arg2: memref<16x16xbf16, #tpu.memory_space<vmem>>, %arg3: memref<8x32xf32, #tpu.memory_space<vmem>>, %arg4: memref<16x32xbf16, #tpu.memory_space<vmem>>, %arg5: memref<1x32x32xbf16, #tpu.memory_space<vmem>>, %arg6: memref<1x1x32xf32, #tpu.memory_space<vmem>>, %arg7: memref<1x32x32xbf16, #tpu.memory_space<vmem>>, %arg8: memref<1x1x32xf32, #tpu.memory_space<vmem>>, %arg9: memref<1x32x32xbf16, #tpu.memory_space<vmem>>, %arg10: memref<1x1x32xf32, #tpu.memory_space<vmem>>, %arg11: memref<1x32x32xbf16, #tpu.memory_space<vmem>>, %arg12: memref<1x1x32xf32, #tpu.memory_space<vmem>>, %arg13: memref<1x32x64xbf16, #tpu.memory_space<vmem>>, %arg14: memref<1x1x64xf32, #tpu.memory_space<vmem>>, %arg15: memref<1x64x32xbf16, #tpu.memory_space<vmem>>, %arg16: memref<1x1x32xf32, #tpu.memory_space<vmem>>, %arg17: memref<1x1x32xf32, #tpu.memory_space<vmem>>, %arg18: memref<1x1x32xf32, #tpu.memory_space<vmem>>, %arg19: memref<1x1x32xf32, #tpu.memory_space<vmem>>, %arg20: memref<1x1x32xf32, #tpu.memory_space<vmem>>, %arg21: memref<32x128xbf16, #tpu.memory_space<vmem>>, %arg22: memref<1x128xf32, #tpu.memory_space<vmem>>, %arg23: memref<2x128xf32, #tpu.memory_space<vmem>>, %arg24: memref<16x32xf32, #tpu.memory_space<vmem>>) attributes {dimension_semantics = [#tpu.dimension_semantics<parallel>, #tpu.dimension_semantics<arbitrary>], iteration_bounds = array<i64: 1, 2>, scalar_prefetch = 0 : i64, scratch_operands = 1 : i64, tpu.core_type = #tpu.core_type<tc>, window_params = [{transform_indices = @transform_0, window_bounds = array<i64: 16, 16>}, {pipeline_mode = #tpu.pipeline_mode<synchronous>, transform_indices = @transform_1, window_bounds = array<i64: 8, 32>}, {pipeline_mode = #tpu.pipeline_mode<synchronous>, transform_indices = @transform_2, window_bounds = array<i64: 16, 32>}, {transform_indices = @transform_3, window_bounds = array<i64: 1, 32, 32>}, {transform_indices = @transform_4, window_bounds = array<i64: 1, 1, 32>}, {transform_indices = @transform_5, window_bounds = array<i64: 1, 32, 32>}, {transform_indices = @transform_6, window_bounds = array<i64: 1, 1, 32>}, {transform_indices = @transform_7, window_bounds = array<i64: 1, 32, 32>}, {transform_indices = @transform_8, window_bounds = array<i64: 1, 1, 32>}, {transform_indices = @transform_9, window_bounds = array<i64: 1, 32, 32>}, {transform_indices = @transform_10, window_bounds = array<i64: 1, 1, 32>}, {transform_indices = @transform_11, window_bounds = array<i64: 1, 32, 64>}, {transform_indices = @transform_12, window_bounds = array<i64: 1, 1, 64>}, {transform_indices = @transform_13, window_bounds = array<i64: 1, 64, 32>}, {transform_indices = @transform_14, window_bounds = array<i64: 1, 1, 32>}, {transform_indices = @transform_15, window_bounds = array<i64: 1, 1, 32>}, {transform_indices = @transform_16, window_bounds = array<i64: 1, 1, 32>}, {transform_indices = @transform_17, window_bounds = array<i64: 1, 1, 32>}, {transform_indices = @transform_18, window_bounds = array<i64: 1, 1, 32>}, {pipeline_mode = #tpu.pipeline_mode<synchronous>, transform_indices = @transform_19, window_bounds = array<i64: 32, 128>}, {pipeline_mode = #tpu.pipeline_mode<synchronous>, transform_indices = @transform_20, window_bounds = array<i64: 1, 128>}, {transform_indices = @transform_21, window_bounds = array<i64: 2, 128>}]} {
    %c0_i32 = arith.constant 0 : i32
    %0 = arith.cmpi eq, %arg1, %c0_i32 : i32
    %1 = arith.extui %0 : i1 to i32
    %c0_i32_0 = arith.constant 0 : i32
    %2 = arith.cmpi ne, %1, %c0_i32_0 : i32
    scf.if %2 {
      %c0_89 = arith.constant 0 : index
      %c0_90 = arith.constant 0 : index
      %190 = vector.load %arg2[%c0_89, %c0_90] : memref<16x16xbf16, #tpu.memory_space<vmem>>, vector<16x16xbf16>
      %c0_91 = arith.constant 0 : index
      %c0_92 = arith.constant 0 : index
      %191 = vector.load %arg4[%c0_91, %c0_92] : memref<16x32xbf16, #tpu.memory_space<vmem>>, vector<16x32xbf16>
      %cst_93 = arith.constant dense<0.000000e+00> : vector<16x32xf32>
      %192 = tpu.matmul %190, %191, %cst_93 {dimension_numbers = #tpu.dot_dimension_numbers<[1], [0], [0], [1], [0, 0, 1, 1], [], []>} : vector<16x16xbf16>, vector<16x32xbf16>, vector<16x32xf32> -> vector<16x32xf32>
      %193 = vector.shape_cast %192 : vector<16x32xf32> to vector<2x8x32xf32>
      %c0_94 = arith.constant 0 : index
      %c0_95 = arith.constant 0 : index
      %194 = vector.load %arg3[%c0_94, %c0_95] : memref<8x32xf32, #tpu.memory_space<vmem>>, vector<8x32xf32>
      %195 = vector.shape_cast %194 : vector<8x32xf32> to vector<1x8x32xf32>
      %196 = vector.broadcast %195 : vector<1x8x32xf32> to vector<2x8x32xf32>
      %197 = arith.addf %193, %196 : vector<2x8x32xf32>
      %198 = vector.shape_cast %197 : vector<2x8x32xf32> to vector<16x32xf32>
      %c0_96 = arith.constant 0 : index
      %c0_97 = arith.constant 0 : index
      %199 = vector.load %arg24[%c0_96, %c0_97] : memref<16x32xf32, #tpu.memory_space<vmem>>, vector<16x32xf32>
      tpu.vector_store %arg24[%c0_96, %c0_97], %198 {strides = array<i32>} : memref<16x32xf32, #tpu.memory_space<vmem>>, vector<16x32xf32>,
    } else {
    }
    %c0 = arith.constant 0 : index
    %c0_1 = arith.constant 0 : index
    %3 = vector.load %arg24[%c0, %c0_1] : memref<16x32xf32, #tpu.memory_space<vmem>>, vector<16x32xf32>
    %4 = arith.truncf %3 : vector<16x32xf32> to vector<16x32xbf16>
    %c0_2 = arith.constant 0 : index
    %c0_3 = arith.constant 0 : index
    %c0_4 = arith.constant 0 : index
    %5 = vector.load %arg5[%c0_2, %c0_3, %c0_4] : memref<1x32x32xbf16, #tpu.memory_space<vmem>>, vector<1x32x32xbf16>
    %6 = vector.shape_cast %5 : vector<1x32x32xbf16> to vector<32x32xbf16>
    %cst = arith.constant dense<0.000000e+00> : vector<16x32xf32>
    %7 = tpu.matmul %4, %6, %cst {dimension_numbers = #tpu.dot_dimension_numbers<[1], [0], [0], [1], [0, 0, 1, 1], [], []>} : vector<16x32xbf16>, vector<32x32xbf16>, vector<16x32xf32> -> vector<16x32xf32>
    %c0_5 = arith.constant 0 : index
    %c0_6 = arith.constant 0 : index
    %c0_7 = arith.constant 0 : index
    %8 = vector.load %arg6[%c0_5, %c0_6, %c0_7] : memref<1x1x32xf32, #tpu.memory_space<vmem>>, vector<1x1x32xf32>
    %9 = vector.shape_cast %8 : vector<1x1x32xf32> to vector<1x32xf32>
    %10 = vector.broadcast %9 : vector<1x32xf32> to vector<16x32xf32>
    %11 = arith.addf %7, %10 : vector<16x32xf32>
    %c0_8 = arith.constant 0 : index
    %c0_9 = arith.constant 0 : index
    %c0_10 = arith.constant 0 : index
    %12 = vector.load %arg7[%c0_8, %c0_9, %c0_10] : memref<1x32x32xbf16, #tpu.memory_space<vmem>>, vector<1x32x32xbf16>
    %13 = vector.shape_cast %12 : vector<1x32x32xbf16> to vector<32x32xbf16>
    %cst_11 = arith.constant dense<0.000000e+00> : vector<16x32xf32>
    %14 = tpu.matmul %4, %13, %cst_11 {dimension_numbers = #tpu.dot_dimension_numbers<[1], [0], [0], [1], [0, 0, 1, 1], [], []>} : vector<16x32xbf16>, vector<32x32xbf16>, vector<16x32xf32> -> vector<16x32xf32>
    %c0_12 = arith.constant 0 : index
    %c0_13 = arith.constant 0 : index
    %c0_14 = arith.constant 0 : index
    %15 = vector.load %arg8[%c0_12, %c0_13, %c0_14] : memref<1x1x32xf32, #tpu.memory_space<vmem>>, vector<1x1x32xf32>
    %16 = vector.shape_cast %15 : vector<1x1x32xf32> to vector<1x32xf32>
    %17 = vector.broadcast %16 : vector<1x32xf32> to vector<16x32xf32>
    %18 = arith.addf %14, %17 : vector<16x32xf32>
    %c0_15 = arith.constant 0 : index
    %c0_16 = arith.constant 0 : index
    %c0_17 = arith.constant 0 : index
    %19 = vector.load %arg9[%c0_15, %c0_16, %c0_17] : memref<1x32x32xbf16, #tpu.memory_space<vmem>>, vector<1x32x32xbf16>
    %20 = vector.shape_cast %19 : vector<1x32x32xbf16> to vector<32x32xbf16>
    %cst_18 = arith.constant dense<0.000000e+00> : vector<16x32xf32>
    %21 = tpu.matmul %4, %20, %cst_18 {dimension_numbers = #tpu.dot_dimension_numbers<[1], [0], [0], [1], [0, 0, 1, 1], [], []>} : vector<16x32xbf16>, vector<32x32xbf16>, vector<16x32xf32> -> vector<16x32xf32>
    %c0_19 = arith.constant 0 : index
    %c0_20 = arith.constant 0 : index
    %c0_21 = arith.constant 0 : index
    %22 = vector.load %arg10[%c0_19, %c0_20, %c0_21] : memref<1x1x32xf32, #tpu.memory_space<vmem>>, vector<1x1x32xf32>
    %23 = vector.shape_cast %22 : vector<1x1x32xf32> to vector<1x32xf32>
    %24 = vector.broadcast %23 : vector<1x32xf32> to vector<16x32xf32>
    %25 = arith.addf %21, %24 : vector<16x32xf32>
    %26 = vector.shape_cast %11 : vector<16x32xf32> to vector<2x8x32xf32>
    %27 = arith.truncf %26 : vector<2x8x32xf32> to vector<2x8x32xbf16>
    %28 = vector.shape_cast %18 : vector<16x32xf32> to vector<2x8x32xf32>
    %29 = arith.truncf %28 : vector<2x8x32xf32> to vector<2x8x32xbf16>
    %30 = vector.shape_cast %25 : vector<16x32xf32> to vector<2x8x32xf32>
    %31 = arith.truncf %30 : vector<2x8x32xf32> to vector<2x8x32xbf16>
    %32 = vector.extract_strided_slice %27 {offsets = [0, 0, 0], sizes = [2, 8, 8], strides = [1, 1, 1]} : vector<2x8x32xbf16> to vector<2x8x8xbf16>
    %33 = vector.extract_strided_slice %29 {offsets = [0, 0, 0], sizes = [2, 8, 8], strides = [1, 1, 1]} : vector<2x8x32xbf16> to vector<2x8x8xbf16>
    "tpu.trace_start"() <{level = 10 : i32, message = "bqd,bkd->bqk"}> : () -> ()
    %cst_22 = arith.constant dense<0.000000e+00> : vector<2x8x8xf32>
    %34 = tpu.matmul %32, %33, %cst_22 {dimension_numbers = #tpu.dot_dimension_numbers<[2], [2], [1], [1], [0, 0, 0, 1, 1, 1], [0], [0]>} : vector<2x8x8xbf16>, vector<2x8x8xbf16>, vector<2x8x8xf32> -> vector<2x8x8xf32>
    "tpu.trace_stop"() : () -> ()
    %cst_23 = arith.constant 0.353553385 : f32
    %35 = vector.broadcast %cst_23 : f32 to vector<2x8x8xf32>
    %36 = arith.mulf %34, %35 : vector<2x8x8xf32>
    %cst_24 = arith.constant dense<0xFF800000> : vector<2x8xf32>
    %37 = vector.multi_reduction <maximumf>, %36, %cst_24 [2] : vector<2x8x8xf32> to vector<2x8xf32>
    %38 = vector.shape_cast %37 : vector<2x8xf32> to vector<2x8x1xf32>
    %39 = vector.broadcast %38 : vector<2x8x1xf32> to vector<2x8x8xf32>
    %40 = arith.subf %36, %39 : vector<2x8x8xf32>
    %41 = math.exp %40 : vector<2x8x8xf32>
    %cst_25 = arith.constant dense<0.000000e+00> : vector<2x8xf32>
    %42 = vector.multi_reduction <add>, %41, %cst_25 [2] : vector<2x8x8xf32> to vector<2x8xf32>
    %43 = vector.shape_cast %42 : vector<2x8xf32> to vector<2x8x1xf32>
    %44 = tpu.reciprocal %43 {approx = true} : vector<2x8x1xf32> -> vector<2x8x1xf32>
    %45 = vector.broadcast %44 : vector<2x8x1xf32> to vector<2x8x8xf32>
    %46 = arith.mulf %41, %45 : vector<2x8x8xf32>
    %47 = arith.truncf %46 : vector<2x8x8xf32> to vector<2x8x8xbf16>
    %48 = vector.extract_strided_slice %31 {offsets = [0, 0, 0], sizes = [2, 8, 8], strides = [1, 1, 1]} : vector<2x8x32xbf16> to vector<2x8x8xbf16>
    "tpu.trace_start"() <{level = 10 : i32, message = "bqk,bkd->bqd"}> : () -> ()
    %cst_26 = arith.constant dense<0.000000e+00> : vector<2x8x8xf32>
    %49 = tpu.matmul %47, %48, %cst_26 {dimension_numbers = #tpu.dot_dimension_numbers<[2], [1], [1], [2], [0, 0, 0, 1, 1, 2], [0], [0]>} : vector<2x8x8xbf16>, vector<2x8x8xbf16>, vector<2x8x8xf32> -> vector<2x8x8xf32>
    "tpu.trace_stop"() : () -> ()
    %50 = vector.extract_strided_slice %27 {offsets = [0, 0, 8], sizes = [2, 8, 8], strides = [1, 1, 1]} : vector<2x8x32xbf16> to vector<2x8x8xbf16>
    %51 = vector.extract_strided_slice %29 {offsets = [0, 0, 8], sizes = [2, 8, 8], strides = [1, 1, 1]} : vector<2x8x32xbf16> to vector<2x8x8xbf16>
    "tpu.trace_start"() <{level = 10 : i32, message = "bqd,bkd->bqk"}> : () -> ()
    %cst_27 = arith.constant dense<0.000000e+00> : vector<2x8x8xf32>
    %52 = tpu.matmul %50, %51, %cst_27 {dimension_numbers = #tpu.dot_dimension_numbers<[2], [2], [1], [1], [0, 0, 0, 1, 1, 1], [0], [0]>} : vector<2x8x8xbf16>, vector<2x8x8xbf16>, vector<2x8x8xf32> -> vector<2x8x8xf32>
    "tpu.trace_stop"() : () -> ()
    %cst_28 = arith.constant 0.353553385 : f32
    %53 = vector.broadcast %cst_28 : f32 to vector<2x8x8xf32>
    %54 = arith.mulf %52, %53 : vector<2x8x8xf32>
    %cst_29 = arith.constant dense<0xFF800000> : vector<2x8xf32>
    %55 = vector.multi_reduction <maximumf>, %54, %cst_29 [2] : vector<2x8x8xf32> to vector<2x8xf32>
    %56 = vector.shape_cast %55 : vector<2x8xf32> to vector<2x8x1xf32>
    %57 = vector.broadcast %56 : vector<2x8x1xf32> to vector<2x8x8xf32>
    %58 = arith.subf %54, %57 : vector<2x8x8xf32>
    %59 = math.exp %58 : vector<2x8x8xf32>
    %cst_30 = arith.constant dense<0.000000e+00> : vector<2x8xf32>
    %60 = vector.multi_reduction <add>, %59, %cst_30 [2] : vector<2x8x8xf32> to vector<2x8xf32>
    %61 = vector.shape_cast %60 : vector<2x8xf32> to vector<2x8x1xf32>
    %62 = tpu.reciprocal %61 {approx = true} : vector<2x8x1xf32> -> vector<2x8x1xf32>
    %63 = vector.broadcast %62 : vector<2x8x1xf32> to vector<2x8x8xf32>
    %64 = arith.mulf %59, %63 : vector<2x8x8xf32>
    %65 = arith.truncf %64 : vector<2x8x8xf32> to vector<2x8x8xbf16>
    %66 = vector.extract_strided_slice %31 {offsets = [0, 0, 8], sizes = [2, 8, 8], strides = [1, 1, 1]} : vector<2x8x32xbf16> to vector<2x8x8xbf16>
    "tpu.trace_start"() <{level = 10 : i32, message = "bqk,bkd->bqd"}> : () -> ()
    %cst_31 = arith.constant dense<0.000000e+00> : vector<2x8x8xf32>
    %67 = tpu.matmul %65, %66, %cst_31 {dimension_numbers = #tpu.dot_dimension_numbers<[2], [1], [1], [2], [0, 0, 0, 1, 1, 2], [0], [0]>} : vector<2x8x8xbf16>, vector<2x8x8xbf16>, vector<2x8x8xf32> -> vector<2x8x8xf32>
    "tpu.trace_stop"() : () -> ()
    %68 = vector.extract_strided_slice %27 {offsets = [0, 0, 16], sizes = [2, 8, 8], strides = [1, 1, 1]} : vector<2x8x32xbf16> to vector<2x8x8xbf16>
    %69 = vector.extract_strided_slice %29 {offsets = [0, 0, 16], sizes = [2, 8, 8], strides = [1, 1, 1]} : vector<2x8x32xbf16> to vector<2x8x8xbf16>
    "tpu.trace_start"() <{level = 10 : i32, message = "bqd,bkd->bqk"}> : () -> ()
    %cst_32 = arith.constant dense<0.000000e+00> : vector<2x8x8xf32>
    %70 = tpu.matmul %68, %69, %cst_32 {dimension_numbers = #tpu.dot_dimension_numbers<[2], [2], [1], [1], [0, 0, 0, 1, 1, 1], [0], [0]>} : vector<2x8x8xbf16>, vector<2x8x8xbf16>, vector<2x8x8xf32> -> vector<2x8x8xf32>
    "tpu.trace_stop"() : () -> ()
    %cst_33 = arith.constant 0.353553385 : f32
    %71 = vector.broadcast %cst_33 : f32 to vector<2x8x8xf32>
    %72 = arith.mulf %70, %71 : vector<2x8x8xf32>
    %cst_34 = arith.constant dense<0xFF800000> : vector<2x8xf32>
    %73 = vector.multi_reduction <maximumf>, %72, %cst_34 [2] : vector<2x8x8xf32> to vector<2x8xf32>
    %74 = vector.shape_cast %73 : vector<2x8xf32> to vector<2x8x1xf32>
    %75 = vector.broadcast %74 : vector<2x8x1xf32> to vector<2x8x8xf32>
    %76 = arith.subf %72, %75 : vector<2x8x8xf32>
    %77 = math.exp %76 : vector<2x8x8xf32>
    %cst_35 = arith.constant dense<0.000000e+00> : vector<2x8xf32>
    %78 = vector.multi_reduction <add>, %77, %cst_35 [2] : vector<2x8x8xf32> to vector<2x8xf32>
    %79 = vector.shape_cast %78 : vector<2x8xf32> to vector<2x8x1xf32>
    %80 = tpu.reciprocal %79 {approx = true} : vector<2x8x1xf32> -> vector<2x8x1xf32>
    %81 = vector.broadcast %80 : vector<2x8x1xf32> to vector<2x8x8xf32>
    %82 = arith.mulf %77, %81 : vector<2x8x8xf32>
    %83 = arith.truncf %82 : vector<2x8x8xf32> to vector<2x8x8xbf16>
    %84 = vector.extract_strided_slice %31 {offsets = [0, 0, 16], sizes = [2, 8, 8], strides = [1, 1, 1]} : vector<2x8x32xbf16> to vector<2x8x8xbf16>
    "tpu.trace_start"() <{level = 10 : i32, message = "bqk,bkd->bqd"}> : () -> ()
    %cst_36 = arith.constant dense<0.000000e+00> : vector<2x8x8xf32>
    %85 = tpu.matmul %83, %84, %cst_36 {dimension_numbers = #tpu.dot_dimension_numbers<[2], [1], [1], [2], [0, 0, 0, 1, 1, 2], [0], [0]>} : vector<2x8x8xbf16>, vector<2x8x8xbf16>, vector<2x8x8xf32> -> vector<2x8x8xf32>
    "tpu.trace_stop"() : () -> ()
    %86 = vector.extract_strided_slice %27 {offsets = [0, 0, 24], sizes = [2, 8, 8], strides = [1, 1, 1]} : vector<2x8x32xbf16> to vector<2x8x8xbf16>
    %87 = vector.extract_strided_slice %29 {offsets = [0, 0, 24], sizes = [2, 8, 8], strides = [1, 1, 1]} : vector<2x8x32xbf16> to vector<2x8x8xbf16>
    "tpu.trace_start"() <{level = 10 : i32, message = "bqd,bkd->bqk"}> : () -> ()
    %cst_37 = arith.constant dense<0.000000e+00> : vector<2x8x8xf32>
    %88 = tpu.matmul %86, %87, %cst_37 {dimension_numbers = #tpu.dot_dimension_numbers<[2], [2], [1], [1], [0, 0, 0, 1, 1, 1], [0], [0]>} : vector<2x8x8xbf16>, vector<2x8x8xbf16>, vector<2x8x8xf32> -> vector<2x8x8xf32>
    "tpu.trace_stop"() : () -> ()
    %cst_38 = arith.constant 0.353553385 : f32
    %89 = vector.broadcast %cst_38 : f32 to vector<2x8x8xf32>
    %90 = arith.mulf %88, %89 : vector<2x8x8xf32>
    %cst_39 = arith.constant dense<0xFF800000> : vector<2x8xf32>
    %91 = vector.multi_reduction <maximumf>, %90, %cst_39 [2] : vector<2x8x8xf32> to vector<2x8xf32>
    %92 = vector.shape_cast %91 : vector<2x8xf32> to vector<2x8x1xf32>
    %93 = vector.broadcast %92 : vector<2x8x1xf32> to vector<2x8x8xf32>
    %94 = arith.subf %90, %93 : vector<2x8x8xf32>
    %95 = math.exp %94 : vector<2x8x8xf32>
    %cst_40 = arith.constant dense<0.000000e+00> : vector<2x8xf32>
    %96 = vector.multi_reduction <add>, %95, %cst_40 [2] : vector<2x8x8xf32> to vector<2x8xf32>
    %97 = vector.shape_cast %96 : vector<2x8xf32> to vector<2x8x1xf32>
    %98 = tpu.reciprocal %97 {approx = true} : vector<2x8x1xf32> -> vector<2x8x1xf32>
    %99 = vector.broadcast %98 : vector<2x8x1xf32> to vector<2x8x8xf32>
    %100 = arith.mulf %95, %99 : vector<2x8x8xf32>
    %101 = arith.truncf %100 : vector<2x8x8xf32> to vector<2x8x8xbf16>
    %102 = vector.extract_strided_slice %31 {offsets = [0, 0, 24], sizes = [2, 8, 8], strides = [1, 1, 1]} : vector<2x8x32xbf16> to vector<2x8x8xbf16>
    "tpu.trace_start"() <{level = 10 : i32, message = "bqk,bkd->bqd"}> : () -> ()
    %cst_41 = arith.constant dense<0.000000e+00> : vector<2x8x8xf32>
    %103 = tpu.matmul %101, %102, %cst_41 {dimension_numbers = #tpu.dot_dimension_numbers<[2], [1], [1], [2], [0, 0, 0, 1, 1, 2], [0], [0]>} : vector<2x8x8xbf16>, vector<2x8x8xbf16>, vector<2x8x8xf32> -> vector<2x8x8xf32>
    "tpu.trace_stop"() : () -> ()
    %104 = tpu.concatenate %49, %67, %85, %103 in 2 : vector<2x8x8xf32>, vector<2x8x8xf32>, vector<2x8x8xf32>, vector<2x8x8xf32> -> vector<2x8x32xf32>
    %105 = vector.shape_cast %104 : vector<2x8x32xf32> to vector<16x32xf32>
    %106 = arith.truncf %105 : vector<16x32xf32> to vector<16x32xbf16>
    %c0_42 = arith.constant 0 : index
    %c0_43 = arith.constant 0 : index
    %c0_44 = arith.constant 0 : index
    %107 = vector.load %arg11[%c0_42, %c0_43, %c0_44] : memref<1x32x32xbf16, #tpu.memory_space<vmem>>, vector<1x32x32xbf16>
    %108 = vector.shape_cast %107 : vector<1x32x32xbf16> to vector<32x32xbf16>
    %cst_45 = arith.constant dense<0.000000e+00> : vector<16x32xf32>
    %109 = tpu.matmul %106, %108, %cst_45 {dimension_numbers = #tpu.dot_dimension_numbers<[1], [0], [0], [1], [0, 0, 1, 1], [], []>} : vector<16x32xbf16>, vector<32x32xbf16>, vector<16x32xf32> -> vector<16x32xf32>
    %c0_46 = arith.constant 0 : index
    %c0_47 = arith.constant 0 : index
    %c0_48 = arith.constant 0 : index
    %110 = vector.load %arg12[%c0_46, %c0_47, %c0_48] : memref<1x1x32xf32, #tpu.memory_space<vmem>>, vector<1x1x32xf32>
    %111 = vector.shape_cast %110 : vector<1x1x32xf32> to vector<1x32xf32>
    %112 = vector.broadcast %111 : vector<1x32xf32> to vector<16x32xf32>
    %113 = arith.addf %109, %112 : vector<16x32xf32>
    %114 = arith.addf %3, %113 : vector<16x32xf32>
    %c0_49 = arith.constant 0 : index
    %c0_50 = arith.constant 0 : index
    %c0_51 = arith.constant 0 : index
    %115 = vector.load %arg17[%c0_49, %c0_50, %c0_51] : memref<1x1x32xf32, #tpu.memory_space<vmem>>, vector<1x1x32xf32>
    %116 = vector.shape_cast %115 : vector<1x1x32xf32> to vector<1x32xf32>
    %c0_52 = arith.constant 0 : index
    %c0_53 = arith.constant 0 : index
    %c0_54 = arith.constant 0 : index
    %117 = vector.load %arg18[%c0_52, %c0_53, %c0_54] : memref<1x1x32xf32, #tpu.memory_space<vmem>>, vector<1x1x32xf32>
    %118 = vector.shape_cast %117 : vector<1x1x32xf32> to vector<1x32xf32>
    %cst_55 = arith.constant dense<0.000000e+00> : vector<16xf32>
    %119 = vector.multi_reduction <add>, %114, %cst_55 [1] : vector<16x32xf32> to vector<16xf32>
    %120 = vector.shape_cast %119 : vector<16xf32> to vector<16x1xf32>
    %cst_56 = arith.constant 3.200000e+01 : f32
    %121 = vector.broadcast %cst_56 : f32 to vector<16x1xf32>
    %122 = arith.divf %120, %121 : vector<16x1xf32>
    %123 = vector.broadcast %122 : vector<16x1xf32> to vector<16x32xf32>
    %124 = arith.subf %114, %123 : vector<16x32xf32>
    %125 = arith.mulf %124, %124 : vector<16x32xf32>
    %cst_57 = arith.constant dense<0.000000e+00> : vector<16xf32>
    %126 = vector.multi_reduction <add>, %125, %cst_57 [1] : vector<16x32xf32> to vector<16xf32>
    %127 = vector.shape_cast %126 : vector<16xf32> to vector<16x1xf32>
    %cst_58 = arith.constant 3.200000e+01 : f32
    %128 = vector.broadcast %cst_58 : f32 to vector<16x1xf32>
    %129 = arith.divf %127, %128 : vector<16x1xf32>
    %130 = vector.broadcast %122 : vector<16x1xf32> to vector<16x32xf32>
    %131 = arith.subf %114, %130 : vector<16x32xf32>
    %cst_59 = arith.constant 9.99999974E-6 : f32
    %132 = vector.broadcast %cst_59 : f32 to vector<16x1xf32>
    %133 = arith.addf %129, %132 : vector<16x1xf32>
    %134 = math.rsqrt %133 : vector<16x1xf32>
    %135 = vector.broadcast %134 : vector<16x1xf32> to vector<16x32xf32>
    %136 = arith.mulf %131, %135 : vector<16x32xf32>
    %137 = vector.broadcast %116 : vector<1x32xf32> to vector<16x32xf32>
    %138 = arith.mulf %136, %137 : vector<16x32xf32>
    %139 = vector.broadcast %118 : vector<1x32xf32> to vector<16x32xf32>
    %140 = arith.addf %138, %139 : vector<16x32xf32>
    %141 = arith.truncf %140 : vector<16x32xf32> to vector<16x32xbf16>
    %c0_60 = arith.constant 0 : index
    %c0_61 = arith.constant 0 : index
    %c0_62 = arith.constant 0 : index
    %142 = vector.load %arg13[%c0_60, %c0_61, %c0_62] : memref<1x32x64xbf16, #tpu.memory_space<vmem>>, vector<1x32x64xbf16>
    %143 = vector.shape_cast %142 : vector<1x32x64xbf16> to vector<32x64xbf16>
    %cst_63 = arith.constant dense<0.000000e+00> : vector<16x64xf32>
    %144 = tpu.matmul %141, %143, %cst_63 {dimension_numbers = #tpu.dot_dimension_numbers<[1], [0], [0], [1], [0, 0, 1, 1], [], []>} : vector<16x32xbf16>, vector<32x64xbf16>, vector<16x64xf32> -> vector<16x64xf32>
    %c0_64 = arith.constant 0 : index
    %c0_65 = arith.constant 0 : index
    %c0_66 = arith.constant 0 : index
    %145 = vector.load %arg14[%c0_64, %c0_65, %c0_66] : memref<1x1x64xf32, #tpu.memory_space<vmem>>, vector<1x1x64xf32>
    %146 = vector.shape_cast %145 : vector<1x1x64xf32> to vector<1x64xf32>
    %147 = vector.broadcast %146 : vector<1x64xf32> to vector<16x64xf32>
    %148 = arith.addf %144, %147 : vector<16x64xf32>
    %cst_67 = arith.constant 0.000000e+00 : f32
    %149 = vector.broadcast %cst_67 : f32 to vector<16x64xf32>
    %150 = arith.maximumf %148, %149 : vector<16x64xf32>
    %151 = arith.truncf %150 : vector<16x64xf32> to vector<16x64xbf16>
    %c0_68 = arith.constant 0 : index
    %c0_69 = arith.constant 0 : index
    %c0_70 = arith.constant 0 : index
    %152 = vector.load %arg15[%c0_68, %c0_69, %c0_70] : memref<1x64x32xbf16, #tpu.memory_space<vmem>>, vector<1x64x32xbf16>
    %153 = vector.shape_cast %152 : vector<1x64x32xbf16> to vector<64x32xbf16>
    %cst_71 = arith.constant dense<0.000000e+00> : vector<16x32xf32>
    %154 = tpu.matmul %151, %153, %cst_71 {dimension_numbers = #tpu.dot_dimension_numbers<[1], [0], [0], [1], [0, 0, 1, 1], [], []>} : vector<16x64xbf16>, vector<64x32xbf16>, vector<16x32xf32> -> vector<16x32xf32>
    %c0_72 = arith.constant 0 : index
    %c0_73 = arith.constant 0 : index
    %c0_74 = arith.constant 0 : index
    %155 = vector.load %arg16[%c0_72, %c0_73, %c0_74] : memref<1x1x32xf32, #tpu.memory_space<vmem>>, vector<1x1x32xf32>
    %156 = vector.shape_cast %155 : vector<1x1x32xf32> to vector<1x32xf32>
    %157 = vector.broadcast %156 : vector<1x32xf32> to vector<16x32xf32>
    %158 = arith.addf %154, %157 : vector<16x32xf32>
    %159 = arith.addf %140, %158 : vector<16x32xf32>
    %c0_75 = arith.constant 0 : index
    %c0_76 = arith.constant 0 : index
    %c0_77 = arith.constant 0 : index
    %160 = vector.load %arg19[%c0_75, %c0_76, %c0_77] : memref<1x1x32xf32, #tpu.memory_space<vmem>>, vector<1x1x32xf32>
    %161 = vector.shape_cast %160 : vector<1x1x32xf32> to vector<1x32xf32>
    %c0_78 = arith.constant 0 : index
    %c0_79 = arith.constant 0 : index
    %c0_80 = arith.constant 0 : index
    %162 = vector.load %arg20[%c0_78, %c0_79, %c0_80] : memref<1x1x32xf32, #tpu.memory_space<vmem>>, vector<1x1x32xf32>
    %163 = vector.shape_cast %162 : vector<1x1x32xf32> to vector<1x32xf32>
    %cst_81 = arith.constant dense<0.000000e+00> : vector<16xf32>
    %164 = vector.multi_reduction <add>, %159, %cst_81 [1] : vector<16x32xf32> to vector<16xf32>
    %165 = vector.shape_cast %164 : vector<16xf32> to vector<16x1xf32>
    %cst_82 = arith.constant 3.200000e+01 : f32
    %166 = vector.broadcast %cst_82 : f32 to vector<16x1xf32>
    %167 = arith.divf %165, %166 : vector<16x1xf32>
    %168 = vector.broadcast %167 : vector<16x1xf32> to vector<16x32xf32>
    %169 = arith.subf %159, %168 : vector<16x32xf32>
    %170 = arith.mulf %169, %169 : vector<16x32xf32>
    %cst_83 = arith.constant dense<0.000000e+00> : vector<16xf32>
    %171 = vector.multi_reduction <add>, %170, %cst_83 [1] : vector<16x32xf32> to vector<16xf32>
    %172 = vector.shape_cast %171 : vector<16xf32> to vector<16x1xf32>
    %cst_84 = arith.constant 3.200000e+01 : f32
    %173 = vector.broadcast %cst_84 : f32 to vector<16x1xf32>
    %174 = arith.divf %172, %173 : vector<16x1xf32>
    %175 = vector.broadcast %167 : vector<16x1xf32> to vector<16x32xf32>
    %176 = arith.subf %159, %175 : vector<16x32xf32>
    %cst_85 = arith.constant 9.99999974E-6 : f32
    %177 = vector.broadcast %cst_85 : f32 to vector<16x1xf32>
    %178 = arith.addf %174, %177 : vector<16x1xf32>
    %179 = math.rsqrt %178 : vector<16x1xf32>
    %180 = vector.broadcast %179 : vector<16x1xf32> to vector<16x32xf32>
    %181 = arith.mulf %176, %180 : vector<16x32xf32>
    %182 = vector.broadcast %161 : vector<1x32xf32> to vector<16x32xf32>
    %183 = arith.mulf %181, %182 : vector<16x32xf32>
    %184 = vector.broadcast %163 : vector<1x32xf32> to vector<16x32xf32>
    %185 = arith.addf %183, %184 : vector<16x32xf32>
    %c0_86 = arith.constant 0 : index
    %c0_87 = arith.constant 0 : index
    %186 = vector.load %arg24[%c0_86, %c0_87] : memref<16x32xf32, #tpu.memory_space<vmem>>, vector<16x32xf32>
    tpu.vector_store %arg24[%c0_86, %c0_87], %185 {strides = array<i32>} : memref<16x32xf32, #tpu.memory_space<vmem>>, vector<16x32xf32>,
    %c1_i32 = arith.constant 1 : i32
    %187 = arith.cmpi eq, %arg1, %c1_i32 : i32
    %188 = arith.extui %187 : i1 to i32
    %c0_i32_88 = arith.constant 0 : i32
    %189 = arith.cmpi ne, %188, %c0_i32_88 : i32
    scf.if %189 {
      %190 = vector.shape_cast %185 : vector<16x32xf32> to vector<2x8x32xf32>
      %cst_89 = arith.constant dense<0xFF800000> : vector<2x32xf32>
      %191 = vector.multi_reduction <maximumf>, %190, %cst_89 [1] : vector<2x8x32xf32> to vector<2x32xf32>
      %192 = arith.truncf %191 : vector<2x32xf32> to vector<2x32xbf16>
      %c0_90 = arith.constant 0 : index
      %c0_91 = arith.constant 0 : index
      %193 = vector.load %arg21[%c0_90, %c0_91] : memref<32x128xbf16, #tpu.memory_space<vmem>>, vector<32x128xbf16>
      %cst_92 = arith.constant dense<0.000000e+00> : vector<2x128xf32>
      %194 = tpu.matmul %192, %193, %cst_92 {dimension_numbers = #tpu.dot_dimension_numbers<[1], [0], [0], [1], [0, 0, 1, 1], [], []>} : vector<2x32xbf16>, vector<32x128xbf16>, vector<2x128xf32> -> vector<2x128xf32>
      %c0_93 = arith.constant 0 : index
      %c0_94 = arith.constant 0 : index
      %195 = vector.load %arg22[%c0_93, %c0_94] : memref<1x128xf32, #tpu.memory_space<vmem>>, vector<1x128xf32>
      %196 = vector.broadcast %195 : vector<1x128xf32> to vector<2x128xf32>
      %197 = arith.addf %194, %196 : vector<2x128xf32>
      %c0_95 = arith.constant 0 : index
      %c0_96 = arith.constant 0 : index
      %198 = vector.load %arg23[%c0_95, %c0_96] : memref<2x128xf32, #tpu.memory_space<vmem>>, vector<2x128xf32>
      tpu.vector_store %arg23[%c0_95, %c0_96], %197 {strides = array<i32>} : memref<2x128xf32, #tpu.memory_space<vmem>>, vector<2x128xf32>,
    } else {
    }
    return
  }
  func.func @transform_0(%arg0: i32, %arg1: i32) -> (i32, i32) {
    %c0_i32 = arith.constant 0 : i32
    %c0_i32_0 = arith.constant 0 : i32
    return %arg0, %c0_i32 : i32, i32
  }
  func.func @transform_1(%arg0: i32, %arg1: i32) -> (i32, i32) {
    %c0_i32 = arith.constant 0 : i32
    %c0_i32_0 = arith.constant 0 : i32
    %c0_i32_1 = arith.constant 0 : i32
    return %c0_i32, %c0_i32_0 : i32, i32
  }
  func.func @transform_2(%arg0: i32, %arg1: i32) -> (i32, i32) {
    %c0_i32 = arith.constant 0 : i32
    %c0_i32_0 = arith.constant 0 : i32
    %c0_i32_1 = arith.constant 0 : i32
    return %c0_i32, %c0_i32_0 : i32, i32
  }
  func.func @transform_3(%arg0: i32, %arg1: i32) -> (i32, i32, i32) {
    %c0_i32 = arith.constant 0 : i32
    %c0_i32_0 = arith.constant 0 : i32
    %c0_i32_1 = arith.constant 0 : i32
    return %arg1, %c0_i32, %c0_i32_0 : i32, i32, i32
  }
  func.func @transform_4(%arg0: i32, %arg1: i32) -> (i32, i32, i32) {
    %c0_i32 = arith.constant 0 : i32
    %c0_i32_0 = arith.constant 0 : i32
    %c0_i32_1 = arith.constant 0 : i32
    return %arg1, %c0_i32, %c0_i32_0 : i32, i32, i32
  }
  func.func @transform_5(%arg0: i32, %arg1: i32) -> (i32, i32, i32) {
    %c0_i32 = arith.constant 0 : i32
    %c0_i32_0 = arith.constant 0 : i32
    %c0_i32_1 = arith.constant 0 : i32
    return %arg1, %c0_i32, %c0_i32_0 : i32, i32, i32
  }
  func.func @transform_6(%arg0: i32, %arg1: i32) -> (i32, i32, i32) {
    %c0_i32 = arith.constant 0 : i32
    %c0_i32_0 = arith.constant 0 : i32
    %c0_i32_1 = arith.constant 0 : i32
    return %arg1, %c0_i32, %c0_i32_0 : i32, i32, i32
  }
  func.func @transform_7(%arg0: i32, %arg1: i32) -> (i32, i32, i32) {
    %c0_i32 = arith.constant 0 : i32
    %c0_i32_0 = arith.constant 0 : i32
    %c0_i32_1 = arith.constant 0 : i32
    return %arg1, %c0_i32, %c0_i32_0 : i32, i32, i32
  }
  func.func @transform_8(%arg0: i32, %arg1: i32) -> (i32, i32, i32) {
    %c0_i32 = arith.constant 0 : i32
    %c0_i32_0 = arith.constant 0 : i32
    %c0_i32_1 = arith.constant 0 : i32
    return %arg1, %c0_i32, %c0_i32_0 : i32, i32, i32
  }
  func.func @transform_9(%arg0: i32, %arg1: i32) -> (i32, i32, i32) {
    %c0_i32 = arith.constant 0 : i32
    %c0_i32_0 = arith.constant 0 : i32
    %c0_i32_1 = arith.constant 0 : i32
    return %arg1, %c0_i32, %c0_i32_0 : i32, i32, i32
  }
  func.func @transform_10(%arg0: i32, %arg1: i32) -> (i32, i32, i32) {
    %c0_i32 = arith.constant 0 : i32
    %c0_i32_0 = arith.constant 0 : i32
    %c0_i32_1 = arith.constant 0 : i32
    return %arg1, %c0_i32, %c0_i32_0 : i32, i32, i32
  }
  func.func @transform_11(%arg0: i32, %arg1: i32) -> (i32, i32, i32) {
    %c0_i32 = arith.constant 0 : i32
    %c0_i32_0 = arith.constant 0 : i32
    %c0_i32_1 = arith.constant 0 : i32
    return %arg1, %c0_i32, %c0_i32_0 : i32, i32, i32
  }
  func.func @transform_12(%arg0: i32, %arg1: i32) -> (i32, i32, i32) {
    %c0_i32 = arith.constant 0 : i32
    %c0_i32_0 = arith.constant 0 : i32
    %c0_i32_1 = arith.constant 0 : i32
    return %arg1, %c0_i32, %c0_i32_0 : i32, i32, i32
  }
  func.func @transform_13(%arg0: i32, %arg1: i32) -> (i32, i32, i32) {
    %c0_i32 = arith.constant 0 : i32
    %c0_i32_0 = arith.constant 0 : i32
    %c0_i32_1 = arith.constant 0 : i32
    return %arg1, %c0_i32, %c0_i32_0 : i32, i32, i32
  }
  func.func @transform_14(%arg0: i32, %arg1: i32) -> (i32, i32, i32) {
    %c0_i32 = arith.constant 0 : i32
    %c0_i32_0 = arith.constant 0 : i32
    %c0_i32_1 = arith.constant 0 : i32
    return %arg1, %c0_i32, %c0_i32_0 : i32, i32, i32
  }
  func.func @transform_15(%arg0: i32, %arg1: i32) -> (i32, i32, i32) {
    %c0_i32 = arith.constant 0 : i32
    %c0_i32_0 = arith.constant 0 : i32
    %c0_i32_1 = arith.constant 0 : i32
    return %arg1, %c0_i32, %c0_i32_0 : i32, i32, i32
  }
  func.func @transform_16(%arg0: i32, %arg1: i32) -> (i32, i32, i32) {
    %c0_i32 = arith.constant 0 : i32
    %c0_i32_0 = arith.constant 0 : i32
    %c0_i32_1 = arith.constant 0 : i32
    return %arg1, %c0_i32, %c0_i32_0 : i32, i32, i32
  }
  func.func @transform_17(%arg0: i32, %arg1: i32) -> (i32, i32, i32) {
    %c0_i32 = arith.constant 0 : i32
    %c0_i32_0 = arith.constant 0 : i32
    %c0_i32_1 = arith.constant 0 : i32
    return %arg1, %c0_i32, %c0_i32_0 : i32, i32, i32
  }
  func.func @transform_18(%arg0: i32, %arg1: i32) -> (i32, i32, i32) {
    %c0_i32 = arith.constant 0 : i32
    %c0_i32_0 = arith.constant 0 : i32
    %c0_i32_1 = arith.constant 0 : i32
    return %arg1, %c0_i32, %c0_i32_0 : i32, i32, i32
  }
  func.func @transform_19(%arg0: i32, %arg1: i32) -> (i32, i32) {
    %c0_i32 = arith.constant 0 : i32
    %c0_i32_0 = arith.constant 0 : i32
    %c0_i32_1 = arith.constant 0 : i32
    return %c0_i32, %c0_i32_0 : i32, i32
  }
  func.func @transform_20(%arg0: i32, %arg1: i32) -> (i32, i32) {
    %c0_i32 = arith.constant 0 : i32
    %c0_i32_0 = arith.constant 0 : i32
    %c0_i32_1 = arith.constant 0 : i32
    return %c0_i32, %c0_i32_0 : i32, i32
  }
  func.func @transform_21(%arg0: i32, %arg1: i32) -> (i32, i32) {
    %c0_i32 = arith.constant 0 : i32
    %c0_i32_0 = arith.constant 0 : i32
    return %arg0, %c0_i32 : i32, i32
  }
}

</mosaic_0001>

<bundles_post_ra>
// kernel: tpu_custom_call.1
= control target key start
LH: loop header
LB: loop body
LE: loop exit
PB: predicated region body
PF: predicated region fallthrough
CT: control target
= control target key end

     0   :  { %s4495_s0 = inlined_call_operand.hbm [shape: bf16[16,16], index: 0, kind: input, shape index: {}]   ;;  %s4496_s1 = inlined_call_operand.hbm [shape: f32[8,32], index: 1, kind: input, shape index: {}]   ;;  %s4497_s2 = inlined_call_operand.hbm [shape: bf16[16,32], index: 2, kind: input, shape index: {}]   ;;  %s4498_s3 = inlined_call_operand.vmem [shape: bf16[2,32,32], index: 3, kind: input, shape index: {}]   ;;  %s4499_s4 = inlined_call_operand.hbm [shape: f32[2,1,32], index: 4, kind: input, shape index: {}]   ;;  %s4500_s5 = inlined_call_operand.vmem [shape: bf16[2,32,32], index: 5, kind: input, shape index: {}]   ;;  %s4501_s6 = inlined_call_operand.hbm [shape: f32[2,1,32], index: 6, kind: input, shape index: {}]   ;;  %s4502_s7 = inlined_call_operand.vmem [shape: bf16[2,32,32], index: 7, kind: input, shape index: {}]   ;;  %s4503_s8 = inlined_call_operand.hbm [shape: f32[2,1,32], index: 8, kind: input, shape index: {}]   ;;  %s4504_s9 = inlined_call_operand.hbm [shape: bf16[2,32,32], index: 9, kind: input, shape index: {}]   ;;  %s4505_s10 = inlined_call_operand.vmem [shape: f32[2,1,32], index: 10, kind: input, shape index: {}]   ;;  %s4506_s11 = inlined_call_operand.hbm [shape: bf16[2,32,64], index: 11, kind: input, shape index: {}]   ;;  %s4507_s12 = inlined_call_operand.vmem [shape: f32[2,1,64], index: 12, kind: input, shape index: {}]   ;;  %s4508_s13 = inlined_call_operand.vmem [shape: bf16[2,64,32], index: 13, kind: input, shape index: {}]   ;;  %s4509_s14 = inlined_call_operand.vmem [shape: f32[2,1,32], index: 14, kind: input, shape index: {}]   ;;  %s4510_s15 = inlined_call_operand.vmem [shape: f32[2,1,32], index: 15, kind: input, shape index: {}]   ;;  %s4511_s16 = inlined_call_operand.vmem [shape: f32[2,1,32], index: 16, kind: input, shape index: {}]   ;;  %s4512_s17 = inlined_call_operand.vmem [shape: f32[2,1,32], index: 17, kind: input, shape index: {}]   ;;  %s4513_s18 = inlined_call_operand.vmem [shape: f32[2,1,32], index: 18, kind: input, shape index: {}]   ;;  %s4514_s19 = inlined_call_operand.vmem [shape: bf16[32,128], index: 19, kind: input, shape index: {}]   ;;  %s4515_s20 = inlined_call_operand.vmem [shape: f32[1,128], index: 20, kind: input, shape index: {}]   ;;  %s4516_s21 = inlined_call_operand.hbm [shape: f32[2,128], index: 21, kind: output, shape index: {}]  }
   0x1   :  { %4526 = sst [smem:[#allocation31_spill]] %s4495_s0 }
   0x2   :  { %4527 = sst [smem:[#allocation32_spill]] %s4496_s1 }
   0x3   :  { %4528 = sst [smem:[#allocation33_spill]] %s4497_s2 }
   0x4   :  { %4529 = sst [smem:[#allocation34_spill]] %s4498_s3 }
   0x5   :  { %4530 = sst [smem:[#allocation35_spill]] %s4499_s4 }
   0x6   :  { %4531 = sst [smem:[#allocation36_spill]] %s4500_s5 }
   0x7   :  { %4532 = sst [smem:[#allocation37_spill]] %s4501_s6 }
   0x8   :  { %4533 = sst [smem:[#allocation38_spill]] %s4502_s7 }
   0x9   :  { %4534 = sst [smem:[#allocation39_spill]] %s4503_s8 }
   0xa   :  { %4535 = sst [smem:[#allocation40_spill]] %s4504_s9 }
   0xb   :  { %4536 = sst [smem:[#allocation41_spill]] %s4506_s11 }
   0xc   :  { %4537 = sst [smem:[#allocation42_spill]] %s4507_s12 }
   0xd   :  { %4538 = sst [smem:[#allocation43_spill]] %s4508_s13 }
   0xe   :  { %4539 = sst [smem:[#allocation44_spill]] %s4509_s14 }
   0xf   :  { %4540 = sst [smem:[#allocation45_spill]] %s4510_s15 }
  0x10   :  { %4541 = sst [smem:[#allocation46_spill]] %s4511_s16 }
  0x11   :  { %4542 = sst [smem:[#allocation47_spill]] %s4512_s17 }
  0x12   :  { %4543 = sst [smem:[#allocation48_spill]] %s4513_s18 }
  0x13   :  { %4544 = sst [smem:[#allocation49_spill]] %s4514_s19 }
  0x14   :  { %4545 = sst [smem:[#allocation50_spill]] %s4515_s20 }
  0x15   :  { %4546 = sst [smem:[#allocation51_spill]] %s4516_s21 }
  0x16   :  { %26 = vsyncpa [#allocation4], 0 }
  0x17   :  { %27 = vsyncpa [#allocation7], 0 }
  0x18   :  { %28 = vsyncpa [#allocation10], 0 }
  0x19   :  { %30 = vsyncpa [#allocation10 + $0x1], 0 }
  0x1a   :  { %31 = vsyncpa [#allocation13], 0 }
  0x1b   :  { %33 = vsyncpa [#allocation13 + $0x1], 0 }
  0x1c   :  { %34 = vsyncpa [#allocation16], 0 }
  0x1d   :  { %36 = vsyncpa [#allocation16 + $0x1], 0 }
  0x1e   :  { %37 = vsyncpa [#allocation5], 0  ;;  %s3900_s2 = smov 0   ;;  %s3902_s25 = smov 0  }
  0x1f   :  { %s3904_s26 = smov 0   ;;  %s3906_s27 = smov 0  }
  0x20   :  { %s3908_s3 = smov 0   ;;  %s3910_s28 = smov 0  }
  0x21 LB: > { %4547 = sst [smem:[#allocation24_spill]] %s3749_s25  ;;  %s3929_s29 = sadd.s32 4294967295, %s3765_s28   ;;  %s3765_s28 = sphi %s3910_s28, %s43_s28   ;;  %s3761_s3 = sphi %s3908_s3, %s4602_s3   ;;  %s3757_s27 = sphi %s3906_s27, %s4601_s27   ;;  %s3753_s26 = sphi %s3904_s26, %s4600_s26   ;;  %s3749_s25 = sphi %s3902_s25, %s4599_s25   ;;  %s3745_s2 = sphi %s3900_s2, %s4598_s2  }
  0x22   : > { %4548 = sst [smem:[#allocation25_spill]] %s3753_s26  ;;  %p169_p0 = scmp.ne.s32.totalorder %s3749_s25, %s3745_s2 }
  0x23   : > { %4549 = sst [smem:[#allocation26_spill]] %s3761_s3  ;;  %p4520_p1 = scmp.eq.s32.totalorder %s3929_s29, 0 }
  0x24   : > { %4550 = sst [smem:[#allocation27_spill]] %s3765_s28  ;;  %p2941_p2 = scmp.ge.s32.totalorder %s3765_s28, 1 }
  0x25   : > { %4551 = sst [smem:[#allocation28_spill]] %s3929_s29  ;;  %p612_p3 = scmp.lt.s32.totalorder %s3765_s28, 3 }
  0x26   : > { %p3937_p4 = por %p4520_p1, %p169_p0  ;;  %s3767_s30 = smov [#allocation6]  }
  0x27   : > { %p3941_p5 = pnand %p2941_p2, %p612_p3  ;;  %s641_s5 = sshll.u32 %s3767_s30, 4  ;;  %s642_s5 = int_to_ptr.vmem [resolvable:$true] %s641_s5 }
  0x28   : > { %s52_s23 = sadd.s32 1, %s3761_s3  ;;  %s156_s1 = sadd.s32 1, %s3753_s26 }
  0x29   : > { %p3279_p6 = pneg %p3941_p5  ;;  %p53_p8 = scmp.ge.s32.totalorder %s52_s23, 2 }
  0x2a   : > { %s3464_s24 = scalar_lea.vmem %s642_s5, 128  ;;  %p3472_p13 = scmp.lt.s32.totalorder %s642_s5, %s642_s5 }
  0x2b   : > { %p3949_p7 = pnand %p3279_p6, %p4520_p1  ;;  %p3465_p10 = scmp.ne.s32.totalorder %s642_s5, %s3464_s24 }
  0x2c   : > { %p3473_p0 = scmp.lt.s32.totalorder %s3464_s24, %s3464_s24 }
  0x2d   : > { %p3455_p9 = pneg %p3949_p7 }
  0x2e   : > { %p3474_p2 = por %p3473_p0, %p3472_p13 }
  0x2f   : > { %p3467_p11 = pnand %p3465_p10, %p3455_p9 }
  0x31   : > { %p3468_p12 = pneg %p3467_p11 }
  0x33   : > { %p3475_p3 = pnand %p3474_p2, %p3468_p12 }
  0x35   : > { %3478 = shalt.err (!%p3475_p3)
}
  0x36   : > { %s4555_s21 = sld [smem:[#allocation32_spill]]  ;;  %s4604_s23 = smov (%p53_p8, %s52_s23), 0 }
  0x37   : > { %4556 = sst [smem:[#allocation29_spill]] %s4604_s23  ;;  %p163_p6 = scmp.ne.s32.totalorder %s3753_s26, %s3749_s25 }
  0x38   : > { %p164_p10 = scmp.eq.s32.totalorder %s3765_s28, 0  ;;  %s153_s24 = ssub.s32 %s3761_s3, %s4604_s23 }
  0x39   : > { %p3308_p11 = scmp.lt.s32.totalorder %s3765_s28, 2  ;;  %p154_p12 = scmp.eq.s32.totalorder %s153_s24, 0 }
  0x3a   : > { %p165_p13 = por %p164_p10, %p163_p6  ;;  %s3975_s30 = sand.u32 1, %s3753_s26  }
  0x3b   : > { %s3978_s20 = scalar_select %p154_p12, %s3753_s26, %s156_s1  }
  0x3c   : > { %3285 = dma.hbm_to_vmem [thread:$0]  (!%p3949_p7), %s4555_s21, 128, %s642_s5, [#allocation7]  }
  0x3d   : > { %4557 = sst [smem:[#allocation30_spill]] %s3978_s20  ;;  %s3981_s19 = sshll.u32 %s3761_s3, 4 }
  0x3e   : > { %s682_s21 = scalar_lea.vmem [#allocation9], %s3975_s30  ;;  %s4558_s23 = sld [smem:[#allocation35_spill]] }
  0x3f   : > { %s689_s5 = sshll.u32 %s682_s21, 4  ;;  %p3988_p8 = pnand %p3308_p11, %p165_p13  ;;  %s690_s5 = int_to_ptr.vmem [resolvable:$true] %s689_s5 }
  0x40   : > { %s4560_s8 = sld [smem:[#allocation39_spill]]  ;;  %s732_s20 = scalar_lea.vmem [#allocation12], %s3975_s30 }
  0x41   : > { %s739_s26 = sshll.u32 %s732_s20, 4  ;;  %s4561_s13 = sand.u32 1, %s3765_s28   ;;  %s740_s26 = int_to_ptr.vmem [resolvable:$true] %s739_s26 }
  0x42   : > { %s3999_s14 = scalar_lea.sflag [#allocation10], %s4561_s13  ;;  %p4003_p0 = pneg %p3988_p8 }
  0x43   : > { %s3492_s17 = scalar_lea.vmem %s690_s5, 16  ;;  %s3768_s18 = smov [#allocation9]  }
  0x44   : > { %s687_s16 = scalar_lea.hbm %s4558_s23, %s3981_s19  ;;  %p3493_p2 = scmp.ne.s32.totalorder %s690_s5, %s3492_s17 }
  0x45   : > { %s3497_s15 = sshll.u32 %s3768_s18, 4  ;;  %s3498_s15 = int_to_ptr.vmem [resolvable:$false] %s3497_s15 }
  0x46   : > { %s737_s1 = scalar_lea.hbm %s4560_s8, %s3981_s19  ;;  %p3495_p3 = pnand %p3493_p2, %p4003_p0 }
  0x47   : > { %s3499_s23 = scalar_lea.vmem %s3498_s15, 32  ;;  %p3500_p10 = scmp.lt.s32.totalorder %s690_s5, %s3498_s15 }
  0x48   : > { %p3496_p6 = pneg %p3495_p3  ;;  %p3501_p11 = scmp.lt.s32.totalorder %s3499_s23, %s3492_s17 }
  0x4a   : > { %p3502_p12 = por %p3501_p11, %p3500_p10 }
  0x4c   : > { %p3503_p13 = pnand %p3502_p12, %p3496_p6 }
  0x4e   : > { %3506 = shalt.err (!%p3503_p13)
}
  0x4f   : > { %3292 = dma.hbm_to_vmem [thread:$0]  (!%p3988_p8), %s687_s16, 16, %s690_s5, %s3999_s14  }
  0x50   : > { %s4014_s20 = scalar_lea.sflag [#allocation13], %s4561_s13  ;;  %s3520_s2 = scalar_lea.vmem %s740_s26, 16 }
  0x51   : > { %p3521_p2 = scmp.ne.s32.totalorder %s740_s26, %s3520_s2  ;;  %s3769_s18 = smov [#allocation12]  }
  0x52   : > { %s3525_s17 = sshll.u32 %s3769_s18, 4  ;;  %s3526_s17 = int_to_ptr.vmem [resolvable:$false] %s3525_s17 }
  0x53   : > { %p3523_p3 = pnand %p3521_p2, %p4003_p0  ;;  %s3527_s15 = scalar_lea.vmem %s3526_s17, 32 }
  0x54   : > { %p3528_p6 = scmp.lt.s32.totalorder %s740_s26, %s3526_s17  ;;  %p3529_p10 = scmp.lt.s32.totalorder %s3527_s15, %s3520_s2 }
  0x55   : > { %p3524_p1 = pneg %p3523_p3 }
  0x56   : > { %p3530_p11 = por %p3529_p10, %p3528_p6 }
  0x58   : > { %p3531_p12 = pnand %p3530_p11, %p3524_p1 }
  0x5a   : > { %3534 = shalt.err (!%p3531_p12)
}
  0x5b   : > { %3298 = dma.hbm_to_vmem [thread:$0]  (!%p3988_p8), %s737_s1, 16, %s740_s26, %s4014_s20  }
  0x5c   : > { %s3770_s23 = smov [#allocation3]  }
  0x5d   : > { %s627_s13 = sshll.u32 %s3770_s23, 4  ;;  %s628_s13 = int_to_ptr.vmem [resolvable:$true] %s627_s13 }
  0x5e   : > { %s3546_s18 = scalar_lea.vmem %s628_s13, 128  ;;  %p3554_p3 = scmp.lt.s32.totalorder %s628_s13, %s628_s13 }
  0x5f   : > { %p3547_p13 = scmp.ne.s32.totalorder %s628_s13, %s3546_s18  ;;  %p3555_p6 = scmp.lt.s32.totalorder %s3546_s18, %s3546_s18 }
  0x61   : > { %p3549_p2 = pnand %p3547_p13, %p3455_p9  ;;  %p3556_p10 = por %p3555_p6, %p3554_p3 }
  0x63   : > { %p3550_p1 = pneg %p3549_p2 }
  0x65   : > { %p3557_p11 = pnand %p3556_p10, %p3550_p1 }
  0x67   : > { %3560 = shalt.err (!%p3557_p11)
}
  0x68   : > { %s3771_s2 = smov 64   ;;  %s3772_s26 = smov 4  }
  0x69   : > { %s4563_s15 = sld [smem:[#allocation31_spill]]  ;;  %s3773_s16 = smov [#allocation8]  }
  0x6a   : > { %s651_s5 = sshll.u32 %s3773_s16, 4  ;;  %s4564_s6 = sld [smem:[#allocation37_spill]]  ;;  %s652_s5 = int_to_ptr.vmem [resolvable:$true] %s651_s5 }
  0x6b   : > { %s707_s28 = scalar_lea.vmem [#allocation11], %s3975_s30  ;;  %s3572_s7 = scalar_lea.vmem %s652_s5, 128 }
  0x6c   : > { %s714_s12 = sshll.u32 %s707_s28, 4  ;;  %p3573_p12 = scmp.ne.s32.totalorder %s652_s5, %s3572_s7  ;;  %s715_s12 = int_to_ptr.vmem [resolvable:$true] %s714_s12 }
  0x6d   : > { %p3580_p1 = scmp.lt.s32.totalorder %s652_s5, %s652_s5  ;;  %p3581_p3 = scmp.lt.s32.totalorder %s3572_s7, %s3572_s7 }
  0x6e   : > { %p3575_p13 = pnand %p3573_p12, %p3455_p9 }
  0x6f   : > { %3282 = dma.hbm_to_vmem [thread:$0]  (!%p3949_p7), %s4563_s15, 128, %s628_s13, [#allocation4], %s3771_s2, %s3771_s2, %s3772_s26  }
  0x70   : > { %s712_s8 = scalar_lea.hbm %s4564_s6, %s3981_s19  ;;  %p3576_p2 = pneg %p3575_p13 }
  0x71   : > { %p3582_p6 = por %p3581_p3, %p3580_p1 }
  0x73   : > { %p3583_p10 = pnand %p3582_p6, %p3576_p2 }
  0x75   : > { %3586 = shalt.err (!%p3583_p10)
}
  0x76   : > { %s4565_s17 = sld [smem:[#allocation33_spill]]  ;;  %s2949_s28 = sshll.u32 %s3975_s30, 4 }
  0x77   : > { %s3600_s15 = scalar_lea.vmem %s715_s12, 16  ;;  %s3774_s7 = smov [#allocation11]  }
  0x78   : > { %p3601_p9 = scmp.ne.s32.totalorder %s715_s12, %s3600_s15  ;;  %s3605_s16 = sshll.u32 %s3774_s7, 4  ;;  %s3606_s16 = int_to_ptr.vmem [resolvable:$false] %s3605_s16 }
  0x79   : > { %s3607_s22 = scalar_lea.vmem %s3606_s16, 32  ;;  %p3608_p13 = scmp.lt.s32.totalorder %s715_s12, %s3606_s16 }
  0x7a   : > { %p3603_p11 = pnand %p3601_p9, %p4003_p0  ;;  %p3609_p2 = scmp.lt.s32.totalorder %s3607_s22, %s3600_s15 }
  0x7c   : > { %3288 = dma.hbm_to_vmem [thread:$0]  (!%p3949_p7), %s4565_s17, 128, %s652_s5, [#allocation7], %s3771_s2, %s3771_s2, %s3772_s26  }
  0x7d   : > { %p3604_p12 = pneg %p3603_p11  ;;  %p3610_p1 = por %p3609_p2, %p3608_p13 }
  0x7f   : > { %p3611_p3 = pnand %p3610_p1, %p3604_p12 }
  0x81   : > { %3614 = shalt.err (!%p3611_p3)
}
  0x82   : > { %3295 = dma.hbm_to_vmem [thread:$0]  (!%p3988_p8), %s712_s8, 16, %s715_s12, %s3999_s14  }
  0x83   : > { %s3028_s18 = sshll.u32 %s3761_s3, 8  ;;  %s4566_s9 = sld [smem:[#allocation40_spill]] }
  0x84   : > { %s750_s15 = scalar_lea.vmem [#allocation14], %s2949_s28  ;;  %s3775_s22 = smov [#allocation14]  }
  0x85   : > { %s757_s7 = sshll.u32 %s750_s15, 4  ;;  %s3633_s19 = sshll.u32 %s3775_s22, 4  ;;  %s758_s7 = int_to_ptr.vmem [resolvable:$true] %s757_s7  ;;  %s3634_s19 = int_to_ptr.vmem [resolvable:$false] %s3633_s19 }
  0x86   : > { %s3628_s16 = scalar_lea.vmem %s758_s7, 256  ;;  %s3635_s5 = scalar_lea.vmem %s3634_s19, 512 }
  0x87   : > { %p3629_p7 = scmp.ne.s32.totalorder %s758_s7, %s3628_s16  ;;  %p3636_p9 = scmp.lt.s32.totalorder %s758_s7, %s3634_s19 }
  0x88   : > { %p3637_p11 = scmp.lt.s32.totalorder %s3635_s5, %s3628_s16 }
  0x89   : > { %s756_s17 = scalar_lea.hbm %s4566_s9, %s3028_s18  ;;  %p3631_p6 = pnand %p3629_p7, %p4003_p0 }
  0x8a   : > { %p3638_p12 = por %p3637_p11, %p3636_p9 }
  0x8b   : > { %p3632_p10 = pneg %p3631_p6 }
  0x8d   : > { %p3639_p13 = pnand %p3638_p12, %p3632_p10 }
  0x8f   : > { %3642 = shalt.err (!%p3639_p13)
}
  0x90   : > { %3301 = dma.hbm_to_vmem [thread:$0]  (!%p3988_p8), %s756_s17, 256, %s758_s7, %s4014_s20, %s3771_s2, %s3771_s2, %s3772_s26  }
  0x91   : > { %s4567_s11 = sld [smem:[#allocation41_spill]]  ;;  %s777_s23 = scalar_lea.vmem [#allocation15], %s2949_s28 }
  0x92   : > { %s784_s13 = sshll.u32 %s777_s23, 4  ;;  %s774_s1 = scalar_lea.sflag [#allocation16], %s3975_s30  ;;  %s785_s13 = int_to_ptr.vmem [resolvable:$true] %s784_s13 }
  0x93   : > { %s3656_s15 = scalar_lea.vmem %s785_s13, 256  ;;  %s3776_s16 = smov [#allocation15]  }
  0x94   : > { %p3657_p2 = scmp.ne.s32.totalorder %s785_s13, %s3656_s15  ;;  %s3661_s22 = sshll.u32 %s3776_s16, 4  ;;  %s3662_s22 = int_to_ptr.vmem [resolvable:$false] %s3661_s22 }
  0x95   : > { %s3663_s19 = scalar_lea.vmem %s3662_s22, 512  ;;  %p3664_p7 = scmp.lt.s32.totalorder %s785_s13, %s3662_s22 }
  0x96   : > { %p3659_p1 = pnand %p3657_p2, %p4003_p0  ;;  %p3665_p6 = scmp.lt.s32.totalorder %s3663_s19, %s3656_s15 }
  0x97   : > { %s783_s14 = scalar_lea.hbm %s4567_s11, %s3028_s18 }
  0x98   : > { %p3660_p3 = pneg %p3659_p1  ;;  %p3666_p10 = por %p3665_p6, %p3664_p7 }
  0x9a   : > { %p3667_p9 = pnand %p3666_p10, %p3660_p3 }
  0x9c   : > { %3670 = shalt.err (!%p3667_p9)
}
  0x9d   : > { %3304 = dma.hbm_to_vmem [thread:$0]  (!%p3988_p8), %s783_s14, 256, %s785_s13, %s774_s1, %s3771_s2, %s3771_s2, %s3772_s26  }
  0x9e   : > { %840 = sbr.rel (%p3941_p5) target bundleno = 4457 (0x1169), region = 104  ;;  %p4568_p0 = scmp.eq.s32.totalorder (!%p3941_p5), %s3929_s29, 0 }
  0xa3   : > { %3720 = dma.done.wait (%p4568_p0), [#allocation4], 128   ;;  %p4569_p11 = pmov %p4568_p0 }
  0xa4   : > { %p4570_p12 = pmov %p4568_p0 }
  0xa5   : > { %3722 = vsyncadd (%p4569_p11), [#allocation4], 4294967168 }
  0xa6   : > { %3724 = dma.done.wait (%p4570_p12), [#allocation7], 256   ;;  %p4571_p13 = pmov %p4568_p0 }
  0xa7   : > { %s854_s30 = sand.u32 1, %s3929_s29   ;;  %s4103_s24 = sand.u32 1, %s3749_s25  }
  0xa8   : > { %3726 = vsyncadd (%p4571_p13), [#allocation7], 4294967040  ;;  %s855_s4 = scalar_lea.sflag [#allocation10], %s854_s30 }
  0xa9   : > { %3728 = dma.done.wait (%p3937_p4), %s855_s4, 32  }
  0xaa   : > { %3730 = vsyncadd (%p3937_p4), %s855_s4, 4294967264  ;;  %s871_s2 = scalar_lea.sflag [#allocation13], %s854_s30 }
  0xab   : > { %3732 = dma.done.wait (%p3937_p4), %s871_s2, 272  }
  0xac   : > { %3734 = vsyncadd (%p3937_p4), %s871_s2, 4294967024  ;;  %s2959_s28 = sshll.u32 %s4103_s24, 4  ;;  %s888_s17 = scalar_lea.sflag [#allocation16], %s4103_s24 }
  0xad   : > { %s4117_s18 = scalar_lea.vmem [#allocation14], %s2959_s28  ;;  %s4120_s7 = scalar_lea.vmem [#allocation15], %s2959_s28 }
  0xae   : > { %3736 = dma.done.wait (%p3937_p4), %s888_s17, 256  }
  0xaf   : > { %3738 = vsyncadd (%p3937_p4), %s888_s17, 4294967040  ;;  %p1004_p5 = scmp.lt.s32.totalorder %s3757_s27, 1  ;;  %s4572_s1 = sld [smem:[#allocation34_spill]] }
  0xb0   : > { %s4573_s19 = sld [smem:[#allocation36_spill]]  ;;  %p2969_p4 = scmp.ne.s32.totalorder %s3757_s27, 0 }
  0xb1   : > { %s4128_s5 = scalar_select %p1004_p5, %s3757_s27, 1 }
  0xb2   : > { %s4574_s28 = sld [smem:[#allocation38_spill]] }
  0xb3   : > { %s3030_s8 = sshll.u32 %s4128_s5, 4  ;;  %s3033_s14 = sshll.u32 %s4128_s5, 5 }
  0xb4   : > { %s4576_s23 = sld [smem:[#allocation44_spill]] }
  0xb5   : > { %s4138_s15 = scalar_lea.vmem %s4572_s1, %s3030_s8  ;;  %s4577_s11 = sld [smem:[#allocation43_spill]] }
  0xb6   : > { %s4143_s30 = scalar_lea.vmem %s4573_s19, %s3030_s8  ;;  %s4578_s3 = sld [smem:[#allocation45_spill]] }
  0xb7   : > { %s4580_s26 = sld [smem:[#allocation47_spill]] }
  0xb8   : > { %s4148_s17 = scalar_lea.vmem %s4574_s28, %s3030_s8  ;;  %s4579_s28 = sld [smem:[#allocation46_spill]] }
  0xb9   : > { %s4581_s0 = sld [smem:[#allocation48_spill]] }
  0xba   : > { %s1032_s13 = scalar_lea.vmem %s4576_s23, %s4128_s5 }
  0xbb   : > { %s4162_s16 = scalar_lea.vmem %s4577_s11, %s3033_s14  ;;  %1049 = sbr.rel (%p2969_p4) target bundleno = 397 (0x18d), region = 140 }
  0xbc   : > { %s1035_s4 = scalar_lea.vmem %s4578_s3, %s4128_s5 }
  0xbd   : > { %s1041_s12 = scalar_lea.vmem %s4580_s26, %s4128_s5 }
  0xbe   : > { %s1038_s25 = scalar_lea.vmem %s4579_s28, %s4128_s5 }
  0xbf   : > { %s1044_s23 = scalar_lea.vmem %s4581_s0, %s4128_s5 }
  0xc0   : > { %v3380_v0 = vld [vmem:[#allocation8] sm:$0xff]   ;;  %v3777_v1 = vmov 0.0   ;;  %v3381_v2 = vld [vmem:[#allocation3] sm:$0xff]   ;;  %vm3778_vm0 = vmmov 0   ;;  %vm1065_vm1 = vcmask 130048   ;;  %v1110_v3 = vld [vmem:[#allocation6] sm:$0xff] }
  0xc1   : > { %3091 = vmatprep.subr.bf16.mxu0 %v3777_v1  ;;  %3093 = vmatprep.mubr.msk.bf16.mxu0 %vm3778_vm0, %v3777_v1  ;;  %vm1113_vm2 = vcmask 261120  }
  0xc2   : > { %3092 = vmatpush3.bf16.msra.mxu0 %v3380_v0 }
  0xc5   : > { %3094 = vmatmul.mubr.msk.bf16.vlgmr.msra.gmra.mxu0 %vm1065_vm1, %v3381_v2 }
 0x185   : > { %v1103_v4 = vpop.f32.mrf.mxu0 }
 0x186   : > { %v1111_v5 = vadd.f32 %v1110_v3, %v1103_v4 }
 0x187   : > { %v3095_v6 = vpop.f32.mrf.mxu0 }
 0x188   : > { %1114 = vst.msk [vmem:[#allocation2] sm:$0xff] %vm1113_vm2, %v1111_v5 }
 0x189   : > { %v1106_v7 = vpop.f32.mrf.mxu0 }
 0x18a   : > { %v1112_v8 = vadd.f32 %v1110_v3, %v1106_v7 }
 0x18b   : > { %v3096_v9 = vpop.f32.mrf.mxu0 }
 0x18c   : > { %1115 = vst.msk [vmem:[#allocation2 + $0x8] sm:$0xff] %vm1113_vm2, %v1112_v8 }
 0x18d PF: > { %v3397_v10 = vld [vmem:[%s4143_s30 + $0x8] sm:$0xff]   ;;  %v3779_v11 = vmov 0.0   ;;  %v3399_v13 = vld [vmem:[%s4143_s30] sm:$0xff]   ;;  %vm3780_vm3 = vmmov 0   ;;  %vm1142_vm4 = vcmask 261120   ;;  %s4582_s9 = scalar_lea.vmem [#allocation11], %s4103_s24  ;;  %s4585_s22 = scalar_lea.vmem %s4505_s10, %s4128_s5 }
 0x18e   : > { %3105 = vmatprep.subr.bf16.mxu1 %v3779_v11  ;;  %3097 = vmatprep.subr.bf16.mxu0 %v3779_v11  ;;  %v3398_v12 = vld [vmem:[%s4138_s15 + $0x8] sm:$0xff]   ;;  %v3400_v14 = vld [vmem:[%s4138_s15] sm:$0xff]   ;;  %s4583_s11 = scalar_lea.vmem [#allocation9], %s4103_s24  ;;  %vm1321_vm5 = vcmask 64512   ;;  %s3781_s3 = smov 120   ;;  %vm1443_vm6 = vcmask 1043456  }
 0x18f   : > { %3106 = vmatpush3.bf16.msra.mxu1 %v3397_v10  ;;  %3109 = vmatprep.mubr.msk.bf16.mxu1 %vm3780_vm3, %v3779_v11  ;;  %v4191_v15 = vld [vmem:[#allocation2] sm:$0xff]  ;;  %v3401_v18 = vld [vmem:[%s4148_s17 + $0x8] sm:$0xff]   ;;  %s4584_s29 = scalar_lea.vmem [#allocation12], %s4103_s24  ;;  %s3782_s24 = smov 112   ;;  %vm2231_vm7 = vcmask 130048   ;;  %vm2234_vm8 = vcmask 195584  }
 0x190   : > { %3098 = vmatpush3.bf16.msra.mxu0 %v3398_v12  ;;  %3107 = vmatprep.subr.bf16.mxu1 %v3779_v11  ;;  %v3402_v19 = vld [vmem:[%s4148_s17] sm:$0xff]   ;;  %s3783_s15 = smov 104   ;;  %s3784_s30 = smov 8   ;;  %vm2462_vm9 = vcmask 523264  }
 0x191   : > { %3099 = vmatprep.subr.bf16.mxu0 %v3779_v11  ;;  %3101 = vmatprep.mubr.msk.bf16.mxu0 %vm3780_vm3, %v3779_v11  ;;  %v2977_v20 = vld [vmem:[%s4582_s9] ss:$0 sm:$0xff]  ;;  %s3785_s17 = smov 16   ;;  %s3786_s14 = smov 24  }
 0x192   : > { %v2973_v25 = vld [vmem:[%s4583_s11] ss:$0 sm:$0xff]  ;;  %p3019_p8 = scmp.ne.s32.totalorder %s3757_s27, 1 }
 0x193   : > { %v4193_v16 = vld [vmem:[#allocation2 + $0x8] sm:$0xff]  ;;  %3108 = vmatpush3.bf16.msra.mxu1 %v3399_v13  ;;  %v2981_v40 = vld [vmem:[%s4584_s29] ss:$0 sm:$0xff] }
 0x194   : > { %v1118_v17 = vpack.c.bf16 %v4193_v16, %v4191_v15  ;;  %3100 = vmatpush3.bf16.msra.mxu0 %v3400_v14  ;;  %3121 = vmatprep.subr.bf16.mxu1 %v3779_v11 }
 0x195   : > { %3113 = vmatprep.subr.bf16.mxu0 %v3779_v11 }
 0x196   : > { %3110 = vmatmul.mubr.msk.bf16.vlgmr.msra.gmra.mxu1 %vm1142_vm4, %v1118_v17 }
 0x197   : > { %3102 = vmatmul.mubr.msk.bf16.vlgmr.msra.gmra.mxu0 %vm1142_vm4, %v1118_v17  ;;  %3123 = vmatprep.mubr.msk.bf16.mxu1 %vm3780_vm3, %v3779_v11 }
 0x198   : > { %3114 = vmatpush3.bf16.msra.mxu0 %v3401_v18  ;;  %3117 = vmatprep.mubr.msk.bf16.mxu0 %vm3780_vm3, %v3779_v11 }
 0x199   : > { %3115 = vmatprep.subr.bf16.mxu0 %v3779_v11 }
 0x19c   : > { %3116 = vmatpush3.bf16.msra.mxu0 %v3402_v19 }
 0x19d   : > { %3127 = vmatprep.subr.bf16.mxu0 %v3779_v11 }
 0x19f   : > { %3118 = vmatmul.mubr.msk.bf16.vlgmr.msra.gmra.mxu0 %vm1142_vm4, %v1118_v17 }
 0x1a0   : > { %3129 = vmatprep.mubr.msk.bf16.mxu0 %vm3780_vm3, %v3779_v11 }
 0x256   : > { %v1244_v21 = vpop.f32.mrf.mxu1 }
 0x257   : > { %v1245_v22 = vadd.f32 %v2977_v20, %v1244_v21  ;;  %v1180_v23 = vpop.f32.mrf.mxu0 }
 0x258   : > { %v3111_v24 = vpop.f32.mrf.mxu1  ;;  %v1181_v29 = vadd.f32 %v2973_v25, %v1180_v23 }
 0x259   : > { %v4218_v26 = vpack.c.bf16 %v1245_v22, %v1245_v22  ;;  %v3103_v27 = vpop.f32.mrf.mxu0 }
 0x25a   : > { %v1247_v28 = vpop.f32.mrf.mxu1  ;;  %v4225_v36 = vpack.c.bf16 %v1181_v29, %v1181_v29 }
 0x25b   : > { %v1248_v30 = vadd.f32 %v2977_v20, %v1247_v28  ;;  %v1326_v31 = vsel %vm1321_vm5, %v4218_v26, 0  ;;  %v1183_v32 = vpop.f32.mrf.mxu0 }
 0x25c   : > { %v3112_v33 = vpop.f32.mrf.mxu1  ;;  %3122 = vmatpush3.bf16.xpose.msra.mxu1 %v1326_v31  ;;  %v1184_v38 = vadd.f32 %v2973_v25, %v1183_v32 }
 0x25d   : > { %v4222_v34 = vpack.c.bf16 %v1248_v30, %v1248_v30  ;;  %v3104_v35 = vpop.f32.mrf.mxu0  ;;  %3133 = vmatprep.subr.bf16.mxu1 %v3779_v11 }
 0x25e   : > { %v4236_v39 = vpack.c.bf16 %v1184_v38, %v1184_v38 }
 0x25f   : > { %1589 = vrot.lane.b32.xlu1 %v4222_v34, %s3781_s3  ;;  %v1372_v37 = vsel %vm1321_vm5, %v4222_v34, 0  ;;  %v1308_v41 = vpop.f32.mrf.mxu0 }
 0x260   : > { %3128 = vmatpush3.bf16.xpose.msra.mxu0 %v1372_v37  ;;  %v1309_v43 = vadd.f32 %v2981_v40, %v1308_v41 }
 0x261   : > { %3139 = vmatprep.subr.bf16.mxu0 %v3779_v11  ;;  %v3119_v42 = vpop.f32.mrf.mxu0 }
 0x262   : > { %v4244_v47 = vpack.c.bf16 %v1309_v43, %v1309_v43 }
 0x263   : > { %3124 = vmatmul.mubr.msk.bf16.vlgmr.msra.gmra.mxu1 %vm1321_vm5, %v4225_v36  ;;  %v1311_v44 = vpop.f32.mrf.mxu0 }
 0x264   : > { %3135 = vmatprep.mubr.msk.bf16.mxu1 %vm3780_vm3, %v3779_v11  ;;  %v1312_v45 = vadd.f32 %v2981_v40, %v1311_v44  ;;  %v1445_v49 = vsel %vm1443_vm6, %v4244_v47, 0 }
 0x265   : > { %v3120_v46 = vpop.f32.mrf.mxu0  ;;  %3134 = vmatpush3.bf16.msra.mxu1 %v1445_v49 }
 0x266   : > { %v4246_v48 = vpack.c.bf16 %v1312_v45, %v1312_v45  ;;  %3145 = vmatprep.subr.bf16.mxu1 %v3779_v11 }
 0x267   : > { %3130 = vmatmul.mubr.msk.bf16.vlgmr.msra.gmra.mxu0 %vm1321_vm5, %v4236_v39 }
 0x268   : > { %3141 = vmatprep.mubr.msk.bf16.mxu0 %vm3780_vm3, %v3779_v11  ;;  %v1491_v50 = vsel %vm1443_vm6, %v4246_v48, 0 }
 0x269   : > { %3140 = vmatpush3.bf16.msra.mxu0 %v1491_v50 }
 0x26a   : > { %3151 = vmatprep.subr.bf16.mxu0 %v3779_v11 }
 0x2d1   : > { %v1590_v9 = vpop.permute.xlu1 %1589 }
 0x2d2   : > { %v1595_v23 = vsel %vm1321_vm5, %v1590_v9, 0 }
 0x323   : > { %v1362_v51 = vpop.f32.mrf.mxu1 }
 0x324   : > { %v1414_v52 = vmul.f32 0.35355338, %v1362_v51 }
 0x325   : > { %v3125_v53 = vpop.f32.mrf.mxu1 }
 0x326   : > { %v1416_v54 = vsel %vm1321_vm5, %v1414_v52, -inf }
 0x327   : > { %1417 = vmax.xlane.f32.xlu0 %v1416_v54  ;;  %v1365_v55 = vpop.f32.mrf.mxu1  ;;  %v1408_v56 = vpop.f32.mrf.mxu0 }
 0x328   : > { %v1415_v57 = vmul.f32 0.35355338, %v1408_v56 }
 0x329   : > { %v3126_v58 = vpop.f32.mrf.mxu1  ;;  %v3131_v59 = vpop.f32.mrf.mxu0 }
 0x32a   : > { %v1419_v60 = vsel %vm1321_vm5, %v1415_v57, -inf }
 0x32b   : > { %1420 = vmax.xlane.f32.xlu0 %v1419_v60  ;;  %v1411_v61 = vpop.f32.mrf.mxu0 }
 0x32d   : > { %v3132_v62 = vpop.f32.mrf.mxu0 }
 0x341   : > { %1537 = vrot.lane.b32.xlu0 %v4218_v26, %s3781_s3 }
 0x3b0   : > { %v1418_v63 = vpop.xlane.xlu0 %1417 }
 0x3b1   : > { %v1422_v0 = vsub.f32 %v1414_v52, %v1418_v63 }
 0x3b3   : > { %v1424_v1 = vmul.f32 1.442695, %v1422_v0 }
 0x3b4   : > { %v1421_v2 = vpop.xlane.xlu0 %1420 }
 0x3b5   : > { %3411 = vpow2.f32 %v1424_v1  ;;  %v1423_v3 = vsub.f32 %v1415_v57, %v1421_v2 }
 0x3b7   : > { %v1426_v4 = vmul.f32 1.442695, %v1423_v3 }
 0x3b8   : > { %v1538_v17 = vpop.permute.xlu0 %1537 }
 0x3b9   : > { %3413 = vpow2.f32 %v1426_v4  ;;  %v1543_v20 = vsel %vm1321_vm5, %v1538_v17, 0 }
 0x3c2   : > { %v3412_v5 = vpop.eup %3411 }
 0x3c3   : > { %v1428_v6 = vsel %vm1321_vm5, %v3412_v5, 0.0 }
 0x3c4   : > { %1429 = vadd.xlane.f32.xlu1 %v1428_v6 }
 0x3c6   : > { %v3414_v7 = vpop.eup %3413 }
 0x3c7   : > { %v1431_v8 = vsel %vm1321_vm5, %v3414_v7, 0.0 }
 0x3c8   : > { %1432 = vadd.xlane.f32.xlu1 %v1431_v8 }
 0x3d9   : > { %1534 = vrot.lane.b32.xlu1 %v4225_v36, %s3781_s3 }
 0x3dd   : > { %1586 = vrot.lane.b32.xlu1 %v4236_v39, %s3781_s3 }
 0x44d   : > { %v1430_v10 = vpop.xlane.xlu1 %1429 }
 0x44e   : > { %3415 = vrcp.f32 %v1430_v10 }
 0x451   : > { %v1433_v12 = vpop.xlane.xlu1 %1432 }
 0x452   : > { %3417 = vrcp.f32 %v1433_v12 }
 0x455   : > { %v1535_v24 = vpop.permute.xlu1 %1534 }
 0x459   : > { %v1587_v25 = vpop.permute.xlu1 %1586 }
 0x45b   : > { %v3416_v13 = vpop.eup %3415 }
 0x45c   : > { %v1436_v14 = vmul.f32 %v3416_v13, %v3412_v5 }
 0x45e   : > { %v1438_v18 = vpack.c.bf16 %v1436_v14, %v1436_v14 }
 0x45f   : > { %v3418_v19 = vpop.eup %3417 }
 0x460   : > { %3136 = vmatmul.mubr.msk.bf16.vlgmr.msra.gmra.mxu1 %vm1321_vm5, %v1438_v18  ;;  %v1437_v21 = vmul.f32 %v3418_v19, %v3414_v7 }
 0x461   : > { %3146 = vmatpush3.bf16.xpose.msra.mxu1 %v1543_v20  ;;  %3147 = vmatprep.mubr.msk.bf16.mxu1 %vm3780_vm3, %v3779_v11 }
 0x462   : > { %v1439_v22 = vpack.c.bf16 %v1437_v21, %v1437_v21  ;;  %3157 = vmatprep.subr.bf16.mxu1 %v3779_v11 }
 0x464   : > { %3142 = vmatmul.mubr.msk.bf16.vlgmr.msra.gmra.mxu0 %vm1321_vm5, %v1439_v22 }
 0x465   : > { %3152 = vmatpush3.bf16.xpose.msra.mxu0 %v1595_v23  ;;  %3153 = vmatprep.mubr.msk.bf16.mxu0 %vm3780_vm3, %v3779_v11 }
 0x466   : > { %3163 = vmatprep.subr.bf16.mxu0 %v3779_v11 }
 0x468   : > { %3148 = vmatmul.mubr.msk.bf16.vlgmr.msra.gmra.mxu1 %vm1321_vm5, %v1535_v24 }
 0x469   : > { %3159 = vmatprep.mubr.msk.bf16.mxu1 %vm3780_vm3, %v3779_v11 }
 0x46c   : > { %3154 = vmatmul.mubr.msk.bf16.vlgmr.msra.gmra.mxu0 %vm1321_vm5, %v1587_v25 }
 0x46d   : > { %3165 = vmatprep.mubr.msk.bf16.mxu0 %vm3780_vm3, %v3779_v11 }
 0x520   : > { %v4280_v27 = vpop.f32.mrf.mxu1 }
 0x522   : > { %v3137_v28 = vpop.f32.mrf.mxu1 }
 0x524   : > { %v1484_v29 = vpop.f32.mrf.mxu1  ;;  %v4282_v30 = vpop.f32.mrf.mxu0 }
 0x526   : > { %v3138_v31 = vpop.f32.mrf.mxu1  ;;  %v3143_v32 = vpop.f32.mrf.mxu0 }
 0x528   : > { %v1530_v33 = vpop.f32.mrf.mxu0  ;;  %v1579_v35 = vpop.f32.mrf.mxu1 }
 0x529   : > { %v1637_v37 = vmul.f32 0.35355338, %v1579_v35 }
 0x52a   : > { %v3144_v38 = vpop.f32.mrf.mxu0  ;;  %v3149_v40 = vpop.f32.mrf.mxu1 }
 0x52b   : > { %v1639_v41 = vsel %vm1321_vm5, %v1637_v37, -inf }
 0x52c   : > { %1640 = vmax.xlane.f32.xlu0 %v1639_v41  ;;  %v1582_v42 = vpop.f32.mrf.mxu1  ;;  %v1631_v43 = vpop.f32.mrf.mxu0 }
 0x52d   : > { %v1638_v44 = vmul.f32 0.35355338, %v1631_v43 }
 0x52e   : > { %v3150_v45 = vpop.f32.mrf.mxu1  ;;  %v3155_v46 = vpop.f32.mrf.mxu0 }
 0x52f   : > { %v1642_v49 = vsel %vm1321_vm5, %v1638_v44, -inf }
 0x530   : > { %1643 = vmax.xlane.f32.xlu1 %v1642_v49  ;;  %v1634_v50 = vpop.f32.mrf.mxu0 }
 0x532   : > { %v3156_v51 = vpop.f32.mrf.mxu0 }
 0x541   : > { %1713 = vrot.lane.b32.xlu1 %v4246_v48, %s3781_s3 }
 0x545   : > { %1763 = vrot.lane.b32.xlu1 %v4218_v26, %s3782_s24 }
 0x549   : > { %1813 = vrot.lane.b32.xlu1 %v4222_v34, %s3782_s24 }
 0x54d   : > { %1811 = vrot.lane.b32.xlu1 %v4236_v39, %s3782_s24 }
 0x5b5   : > { %v1641_v52 = vpop.xlane.xlu0 %1640 }
 0x5b6   : > { %v1645_v53 = vsub.f32 %v1637_v37, %v1641_v52 }
 0x5b8   : > { %v1647_v54 = vmul.f32 1.442695, %v1645_v53 }
 0x5b9   : > { %v1644_v55 = vpop.xlane.xlu1 %1643 }
 0x5ba   : > { %3419 = vpow2.f32 %v1647_v54  ;;  %v1646_v56 = vsub.f32 %v1638_v44, %v1644_v55 }
 0x5bc   : > { %v1649_v57 = vmul.f32 1.442695, %v1646_v56 }
 0x5bd   : > { %v1714_v58 = vpop.permute.xlu1 %1713 }
 0x5be   : > { %3421 = vpow2.f32 %v1649_v57  ;;  %v1719_v59 = vsel %vm1443_vm6, %v1714_v58, 0 }
 0x5bf   : > { %3164 = vmatpush3.bf16.msra.mxu0 %v1719_v59 }
 0x5c0   : > { %3175 = vmatprep.subr.bf16.mxu0 %v3779_v11 }
 0x5c1   : > { %v1764_v5 = vpop.permute.xlu1 %1763 }
 0x5c2   : > { %v1769_v9 = vsel %vm1321_vm5, %v1764_v5, 0 }
 0x5c5   : > { %v1814_v12 = vpop.permute.xlu1 %1813 }
 0x5c6   : > { %v1819_v14 = vsel %vm1321_vm5, %v1814_v12, 0 }
 0x5c7   : > { %v3420_v60 = vpop.eup %3419 }
 0x5c8   : > { %v1651_v61 = vsel %vm1321_vm5, %v3420_v60, 0.0 }
 0x5c9   : > { %1652 = vadd.xlane.f32.xlu0 %v1651_v61  ;;  %v1812_v18 = vpop.permute.xlu1 %1811 }
 0x5cb   : > { %v3422_v62 = vpop.eup %3421 }
 0x5cc   : > { %v1654_v63 = vsel %vm1321_vm5, %v3422_v62, 0.0 }
 0x5cd   : > { %1655 = vadd.xlane.f32.xlu0 %v1654_v63 }
 0x5e3   : > { %1664 = vrot.lane.b32.xlu0 %v4244_v47, %s3781_s3 }
 0x5e7   : > { %1761 = vrot.lane.b32.xlu0 %v4225_v36, %s3782_s24 }
 0x652   : > { %v1653_v0 = vpop.xlane.xlu0 %1652 }
 0x653   : > { %3423 = vrcp.f32 %v1653_v0 }
 0x656   : > { %v1656_v1 = vpop.xlane.xlu0 %1655 }
 0x657   : > { %3425 = vrcp.f32 %v1656_v1 }
 0x65a   : > { %v1665_v2 = vpop.permute.xlu0 %1664 }
 0x65b   : > { %v1670_v3 = vsel %vm1443_vm6, %v1665_v2, 0 }
 0x65c   : > { %3158 = vmatpush3.bf16.msra.mxu1 %v1670_v3 }
 0x65d   : > { %3169 = vmatprep.subr.bf16.mxu1 %v3779_v11 }
 0x65e   : > { %v1762_v17 = vpop.permute.xlu0 %1761 }
 0x660   : > { %v3424_v4 = vpop.eup %3423 }
 0x661   : > { %v1659_v6 = vmul.f32 %v3424_v4, %v3420_v60 }
 0x663   : > { %v1661_v7 = vpack.c.bf16 %v1659_v6, %v1659_v6 }
 0x664   : > { %v3426_v8 = vpop.eup %3425 }
 0x665   : > { %3160 = vmatmul.mubr.msk.bf16.vlgmr.msra.gmra.mxu1 %vm1321_vm5, %v1661_v7  ;;  %v1660_v10 = vmul.f32 %v3426_v8, %v3422_v62 }
 0x666   : > { %3170 = vmatpush3.bf16.xpose.msra.mxu1 %v1769_v9  ;;  %3171 = vmatprep.mubr.msk.bf16.mxu1 %vm3780_vm3, %v3779_v11 }
 0x667   : > { %v1662_v13 = vpack.c.bf16 %v1660_v10, %v1660_v10  ;;  %3181 = vmatprep.subr.bf16.mxu1 %v3779_v11 }
 0x669   : > { %3166 = vmatmul.mubr.msk.bf16.vlgmr.msra.gmra.mxu0 %vm1321_vm5, %v1662_v13 }
 0x66a   : > { %3176 = vmatpush3.bf16.xpose.msra.mxu0 %v1819_v14  ;;  %3177 = vmatprep.mubr.msk.bf16.mxu0 %vm3780_vm3, %v3779_v11 }
 0x66b   : > { %3187 = vmatprep.subr.bf16.mxu0 %v3779_v11 }
 0x66d   : > { %3172 = vmatmul.mubr.msk.bf16.vlgmr.msra.gmra.mxu1 %vm1321_vm5, %v1762_v17 }
 0x66e   : > { %3183 = vmatprep.mubr.msk.bf16.mxu1 %vm3780_vm3, %v3779_v11 }
 0x671   : > { %3178 = vmatmul.mubr.msk.bf16.vlgmr.msra.gmra.mxu0 %vm1321_vm5, %v1812_v18 }
 0x672   : > { %3189 = vmatprep.mubr.msk.bf16.mxu0 %vm3780_vm3, %v3779_v11 }
 0x725   : > { %v4320_v19 = vpop.f32.mrf.mxu1 }
 0x727   : > { %v3161_v20 = vpop.f32.mrf.mxu1 }
 0x729   : > { %v1709_v21 = vpop.f32.mrf.mxu1  ;;  %v4322_v22 = vpop.f32.mrf.mxu0 }
 0x72a   : > { %v3382_v23 = vpack.i.bf16 %v4322_v22, %v4320_v19 }
 0x72b   : > { %v3162_v24 = vpop.f32.mrf.mxu1  ;;  %v3167_v25 = vpop.f32.mrf.mxu0 }
 0x72d   : > { %v1758_v28 = vpop.f32.mrf.mxu0  ;;  %v1805_v29 = vpop.f32.mrf.mxu1 }
 0x72e   : > { %v1861_v31 = vmul.f32 0.35355338, %v1805_v29 }
 0x72f   : > { %v3168_v32 = vpop.f32.mrf.mxu0  ;;  %v3173_v33 = vpop.f32.mrf.mxu1 }
 0x730   : > { %v1863_v35 = vsel %vm1321_vm5, %v1861_v31, -inf }
 0x731   : > { %1864 = vmax.xlane.f32.xlu0 %v1863_v35  ;;  %v1808_v37 = vpop.f32.mrf.mxu1  ;;  %v1855_v38 = vpop.f32.mrf.mxu0 }
 0x732   : > { %v1862_v40 = vmul.f32 0.35355338, %v1855_v38 }
 0x733   : > { %v3174_v41 = vpop.f32.mrf.mxu1  ;;  %v3179_v42 = vpop.f32.mrf.mxu0 }
 0x734   : > { %v1866_v43 = vsel %vm1321_vm5, %v1862_v40, -inf }
 0x735   : > { %1867 = vmax.xlane.f32.xlu1 %v1866_v43  ;;  %v1858_v44 = vpop.f32.mrf.mxu0 }
 0x737   : > { %v3180_v45 = vpop.f32.mrf.mxu0 }
 0x746   : > { %1935 = vrot.lane.b32.xlu1 %v4246_v48, %s3782_s24 }
 0x74a   : > { %1985 = vrot.lane.b32.xlu1 %v4218_v26, %s3783_s15 }
 0x74e   : > { %2035 = vrot.lane.b32.xlu1 %v4222_v34, %s3783_s15 }
 0x752   : > { %2033 = vrot.lane.b32.xlu1 %v4236_v39, %s3783_s15 }
 0x7ba   : > { %v1865_v46 = vpop.xlane.xlu0 %1864 }
 0x7bb   : > { %v1869_v49 = vsub.f32 %v1861_v31, %v1865_v46 }
 0x7bd   : > { %v1871_v50 = vmul.f32 1.442695, %v1869_v49 }
 0x7be   : > { %v1868_v51 = vpop.xlane.xlu1 %1867 }
 0x7bf   : > { %3427 = vpow2.f32 %v1871_v50  ;;  %v1870_v52 = vsub.f32 %v1862_v40, %v1868_v51 }
 0x7c1   : > { %v1873_v53 = vmul.f32 1.442695, %v1870_v52 }
 0x7c2   : > { %v1936_v54 = vpop.permute.xlu1 %1935 }
 0x7c3   : > { %3429 = vpow2.f32 %v1873_v53  ;;  %v1941_v55 = vsel %vm1443_vm6, %v1936_v54, 0 }
 0x7c4   : > { %3188 = vmatpush3.bf16.msra.mxu0 %v1941_v55 }
 0x7c5   : > { %3199 = vmatprep.subr.bf16.mxu0 %v3779_v11 }
 0x7c6   : > { %v1986_v62 = vpop.permute.xlu1 %1985 }
 0x7c7   : > { %v1991_v2 = vsel %vm1321_vm5, %v1986_v62, 0 }
 0x7ca   : > { %v2036_v3 = vpop.permute.xlu1 %2035 }
 0x7cb   : > { %v2041_v5 = vsel %vm1321_vm5, %v2036_v3, 0 }
 0x7cc   : > { %v3428_v26 = vpop.eup %3427 }
 0x7cd   : > { %v1875_v34 = vsel %vm1321_vm5, %v3428_v26, 0.0 }
 0x7ce   : > { %1876 = vadd.xlane.f32.xlu0 %v1875_v34  ;;  %v2034_v7 = vpop.permute.xlu1 %2033 }
 0x7d0   : > { %v3430_v56 = vpop.eup %3429 }
 0x7d1   : > { %v1878_v39 = vsel %vm1321_vm5, %v3430_v56, 0.0 }
 0x7d2   : > { %1879 = vadd.xlane.f32.xlu0 %v1878_v39 }
 0x7e8   : > { %1887 = vrot.lane.b32.xlu0 %v4244_v47, %s3782_s24 }
 0x7ec   : > { %1983 = vrot.lane.b32.xlu0 %v4225_v36, %s3783_s15 }
 0x857   : > { %v1877_v57 = vpop.xlane.xlu0 %1876 }
 0x858   : > { %3431 = vrcp.f32 %v1877_v57  ;;  %v3403_v57 = vld [vmem:[%s4117_s18 + $0x8] sm:$0xff]  }
 0x85b   : > { %v1880_v58 = vpop.xlane.xlu0 %1879 }
 0x85c   : > { %3433 = vrcp.f32 %v1880_v58  ;;  %v3404_v58 = vld [vmem:[%s4117_s18] sm:$0xff]  }
 0x85f   : > { %v1888_v59 = vpop.permute.xlu0 %1887 }
 0x860   : > { %v1893_v60 = vsel %vm1443_vm6, %v1888_v59, 0 }
 0x861   : > { %3182 = vmatpush3.bf16.msra.mxu1 %v1893_v60 }
 0x862   : > { %3193 = vmatprep.subr.bf16.mxu1 %v3779_v11 }
 0x863   : > { %v1984_v6 = vpop.permute.xlu0 %1983 }
 0x865   : > { %v3432_v61 = vpop.eup %3431 }
 0x866   : > { %v1883_v63 = vmul.f32 %v3432_v61, %v3428_v26 }
 0x868   : > { %v1885_v0 = vpack.c.bf16 %v1883_v63, %v1883_v63 }
 0x869   : > { %v3434_v1 = vpop.eup %3433 }
 0x86a   : > { %3184 = vmatmul.mubr.msk.bf16.vlgmr.msra.gmra.mxu1 %vm1321_vm5, %v1885_v0  ;;  %v1884_v36 = vmul.f32 %v3434_v1, %v3430_v56 }
 0x86b   : > { %3194 = vmatpush3.bf16.xpose.msra.mxu1 %v1991_v2  ;;  %3195 = vmatprep.mubr.msk.bf16.mxu1 %vm3780_vm3, %v3779_v11 }
 0x86c   : > { %v1886_v4 = vpack.c.bf16 %v1884_v36, %v1884_v36  ;;  %3205 = vmatprep.subr.bf16.mxu1 %v3779_v11 }
 0x86e   : > { %3190 = vmatmul.mubr.msk.bf16.vlgmr.msra.gmra.mxu0 %vm1321_vm5, %v1886_v4 }
 0x86f   : > { %3200 = vmatpush3.bf16.xpose.msra.mxu0 %v2041_v5  ;;  %3201 = vmatprep.mubr.msk.bf16.mxu0 %vm3780_vm3, %v3779_v11 }
 0x870   : > { %3211 = vmatprep.subr.bf16.mxu0 %v3779_v11 }
 0x872   : > { %3196 = vmatmul.mubr.msk.bf16.vlgmr.msra.gmra.mxu1 %vm1321_vm5, %v1984_v6 }
 0x873   : > { %3207 = vmatprep.mubr.msk.bf16.mxu1 %vm3780_vm3, %v3779_v11 }
 0x876   : > { %3202 = vmatmul.mubr.msk.bf16.vlgmr.msra.gmra.mxu0 %vm1321_vm5, %v2034_v7 }
 0x877   : > { %3213 = vmatprep.mubr.msk.bf16.mxu0 %vm3780_vm3, %v3779_v11 }
 0x92a   : > { %v1929_v8 = vpop.f32.mrf.mxu1 }
 0x92c   : > { %v3185_v9 = vpop.f32.mrf.mxu1 }
 0x92e   : > { %v1932_v10 = vpop.f32.mrf.mxu1  ;;  %v1977_v12 = vpop.f32.mrf.mxu0 }
 0x92f   : > { %v3387_v40 = vpack.i.bf16 %v1977_v12, %v1929_v8 }
 0x930   : > { %v3186_v13 = vpop.f32.mrf.mxu1  ;;  %v3191_v14 = vpop.f32.mrf.mxu0 }
 0x932   : > { %v1980_v17 = vpop.f32.mrf.mxu0  ;;  %v2027_v18 = vpop.f32.mrf.mxu1 }
 0x933   : > { %v2083_v20 = vmul.f32 0.35355338, %v2027_v18 }
 0x934   : > { %v3192_v21 = vpop.f32.mrf.mxu0  ;;  %v3197_v24 = vpop.f32.mrf.mxu1 }
 0x935   : > { %v2085_v25 = vsel %vm1321_vm5, %v2083_v20, -inf }
 0x936   : > { %2086 = vmax.xlane.f32.xlu0 %v2085_v25  ;;  %v2030_v28 = vpop.f32.mrf.mxu1  ;;  %v2077_v29 = vpop.f32.mrf.mxu0 }
 0x937   : > { %v2084_v31 = vmul.f32 0.35355338, %v2077_v29 }
 0x938   : > { %v3198_v32 = vpop.f32.mrf.mxu1  ;;  %v3203_v33 = vpop.f32.mrf.mxu0 }
 0x939   : > { %v2088_v35 = vsel %vm1321_vm5, %v2084_v31, -inf }
 0x93a   : > { %2089 = vmax.xlane.f32.xlu1 %v2088_v35  ;;  %v2080_v37 = vpop.f32.mrf.mxu0 }
 0x93c   : > { %v3204_v38 = vpop.f32.mrf.mxu0 }
 0x94b   : > { %2157 = vrot.lane.b32.xlu1 %v4246_v48, %s3783_s15 }
 0x94f   : > { %3383 = vrot.lane.b32.xlu1 %v3382_v23, %s3784_s30  ;;  %s4593_s30 = sld [smem:[#allocation49_spill]] (!%p3019_p8) }
 0x953   : > { %3388 = vrot.lane.b32.xlu1 %v3387_v40, %s3785_s17 }
 0x9bf   : > { %v2087_v41 = vpop.xlane.xlu0 %2086 }
 0x9c0   : > { %v2091_v42 = vsub.f32 %v2083_v20, %v2087_v41 }
 0x9c2   : > { %v2093_v43 = vmul.f32 1.442695, %v2091_v42 }
 0x9c3   : > { %v2090_v44 = vpop.xlane.xlu1 %2089 }
 0x9c4   : > { %3435 = vpow2.f32 %v2093_v43  ;;  %v2092_v45 = vsub.f32 %v2084_v31, %v2090_v44 }
 0x9c6   : > { %v2095_v46 = vmul.f32 1.442695, %v2092_v45 }
 0x9c7   : > { %v2158_v49 = vpop.permute.xlu1 %2157 }
 0x9c8   : > { %3437 = vpow2.f32 %v2095_v46  ;;  %v2163_v50 = vsel %vm1443_vm6, %v2158_v49, 0 }
 0x9c9   : > { %3212 = vmatpush3.bf16.msra.mxu0 %v2163_v50 }
 0x9ca   : > { %3225 = vmatprep.subr.bf16.mxu0 %v3779_v11 }
 0x9cb   : > { %v3384_v3 = vpop.permute.xlu1 %3383 }
 0x9cc   : > { %v3386_v5 = vunpack.i.h.bf16 %v3384_v3  ;;  %v3385_v6 = vunpack.i.l.bf16 %v3384_v3 }
 0x9ce   : > { %v2230_v10 = vsel %vm1321_vm5, %v4282_v30, %v3386_v5  ;;  %v2229_v12 = vsel %vm1321_vm5, %v4280_v27, %v3385_v6  ;;  %v3001_v30 = vld [vmem:[%s4585_s22] ss:$0 sm:$0xff] }
 0x9cf   : > { %v3389_v4 = vpop.permute.xlu1 %3388 }
 0x9d0   : > { %v3391_v7 = vunpack.i.h.bf16 %v3389_v4  ;;  %v3390_v8 = vunpack.i.l.bf16 %v3389_v4 }
 0x9d1   : > { %v3436_v48 = vpop.eup %3435 }
 0x9d2   : > { %v2097_v19 = vsel %vm1321_vm5, %v3436_v48, 0.0  ;;  %v2232_v17 = vsel %vm2231_vm7, %v2229_v12, %v3390_v8  ;;  %v2233_v18 = vsel %vm2231_vm7, %v2230_v10, %v3391_v7 }
 0x9d3   : > { %2098 = vadd.xlane.f32.xlu0 %v2097_v19  ;;  %v3407_v19 = vld [vmem:[%s4162_s16 + $0x18] sm:$0xff]  }
 0x9d5   : > { %v3438_v22 = vpop.eup %3437 }
 0x9d6   : > { %v2100_v23 = vsel %vm1321_vm5, %v3438_v22, 0.0 }
 0x9d7   : > { %2101 = vadd.xlane.f32.xlu0 %v2100_v23 }
 0x9ed   : > { %2109 = vrot.lane.b32.xlu0 %v4244_v47, %s3783_s15 }
 0xa5c   : > { %v2099_v51 = vpop.xlane.xlu0 %2098 }
 0xa5d   : > { %3439 = vrcp.f32 %v2099_v51 }
 0xa60   : > { %v2102_v52 = vpop.xlane.xlu0 %2101 }
 0xa61   : > { %3441 = vrcp.f32 %v2102_v52 }
 0xa64   : > { %v2110_v53 = vpop.permute.xlu0 %2109 }
 0xa65   : > { %v2115_v54 = vsel %vm1443_vm6, %v2110_v53, 0 }
 0xa66   : > { %3206 = vmatpush3.bf16.msra.mxu1 %v2115_v54 }
 0xa67   : > { %3217 = vmatprep.subr.bf16.mxu1 %v3779_v11 }
 0xa6a   : > { %v3440_v55 = vpop.eup %3439 }
 0xa6b   : > { %v2105_v26 = vmul.f32 %v3440_v55, %v3436_v48  ;;  %v3406_v48 = vld [vmem:[%s4120_s7] sm:$0xff]  }
 0xa6d   : > { %v2107_v34 = vpack.c.bf16 %v2105_v26, %v2105_v26 }
 0xa6e   : > { %v3442_v56 = vpop.eup %3441 }
 0xa6f   : > { %3208 = vmatmul.mubr.msk.bf16.vlgmr.msra.gmra.mxu1 %vm1321_vm5, %v2107_v34  ;;  %v2106_v39 = vmul.f32 %v3442_v56, %v3438_v22  ;;  %v3005_v34 = vld [vmem:[%s1035_s4] ss:$0 sm:$0xff] }
 0xa70   : > { %3221 = vmatprep.mubr.msk.bf16.mxu1 %vm3780_vm3, %v3779_v11  ;;  %3218 = vmatpush3.bf16.msra.mxu1 %v3403_v57  ;;  %v3006_v57 = vld [vmem:[%s1038_s25] ss:$0 sm:$0xff]  ;;  %s4588_s25 = sld [smem:[#allocation42_spill]] }
 0xa71   : > { %v2108_v47 = vpack.c.bf16 %v2106_v39, %v2106_v39  ;;  %3219 = vmatprep.subr.bf16.mxu1 %v3779_v11 }
 0xa73   : > { %3214 = vmatmul.mubr.msk.bf16.vlgmr.msra.gmra.mxu0 %vm1321_vm5, %v2108_v47 }
 0xa74   : > { %3229 = vmatprep.mubr.msk.bf16.mxu0 %vm3780_vm3, %v3779_v11  ;;  %3220 = vmatpush3.bf16.msra.mxu1 %v3404_v58 }
 0xa75   : > { %3233 = vmatprep.subr.bf16.mxu1 %v3779_v11 }
 0xa76   : > { %s4589_s26 = scalar_lea.vmem %s4588_s25, %s4128_s5 }
 0xb2f   : > { %v2151_v59 = vpop.f32.mrf.mxu1 }
 0xb31   : > { %v3209_v60 = vpop.f32.mrf.mxu1 }
 0xb33   : > { %v2154_v61 = vpop.f32.mrf.mxu1  ;;  %v2199_v62 = vpop.f32.mrf.mxu0 }
 0xb34   : > { %v3392_v63 = vpack.i.bf16 %v2199_v62, %v2151_v59  ;;  %v3408_v62 = vld [vmem:[%s4162_s16 + $0x10] sm:$0xff]  }
 0xb35   : > { %v3210_v0 = vpop.f32.mrf.mxu1  ;;  %v3215_v1 = vpop.f32.mrf.mxu0 }
 0xb36   : > { %3393 = vrot.lane.b32.xlu0 %v3392_v63, %s3786_s14  ;;  %v3409_v63 = vld [vmem:[%s4162_s16 + $0x8] sm:$0xff]   ;;  %v3410_v0 = vld [vmem:[%s4162_s16] sm:$0xff]   ;;  %s4594_s14 = sld [smem:[#allocation50_spill]] (!%p3019_p8) }
 0xb37   : > { %v2202_v2 = vpop.f32.mrf.mxu0  ;;  %v3007_v1 = vld [vmem:[%s4589_s26] ss:$0 sm:$0xff] }
 0xb39   : > { %v3216_v36 = vpop.f32.mrf.mxu0 }
 0xba8   : > { %v3394_v9 = vpop.permute.xlu0 %3393 }
 0xba9   : > { %v3396_v13 = vunpack.i.h.bf16 %v3394_v9  ;;  %v3395_v14 = vunpack.i.l.bf16 %v3394_v9 }
 0xbab   : > { %v2236_v20 = vsel %vm2234_vm8, %v2233_v18, %v3396_v13  ;;  %v2235_v21 = vsel %vm2234_vm8, %v2232_v17, %v3395_v14 }
 0xbac   : > { %v2237_v24 = vpack.c.bf16 %v2236_v20, %v2235_v21 }
 0xbae   : > { %3222 = vmatmul.mubr.msk.bf16.vlgmr.msra.gmra.mxu1 %vm1142_vm4, %v2237_v24 }
 0xbaf   : > { %3241 = vmatprep.mubr.msk.bf16.mxu1 %vm3780_vm3, %v3779_v11  ;;  %3234 = vmatpush3.bf16.msra.mxu1 %v3407_v19 }
 0xbb0   : > { %3235 = vmatprep.subr.bf16.mxu1 %v3779_v11 }
 0xbb3   : > { %3236 = vmatpush3.bf16.msra.mxu1 %v3408_v62 }
 0xbb4   : > { %3237 = vmatprep.subr.bf16.mxu1 %v3779_v11 }
 0xbb7   : > { %3238 = vmatpush3.bf16.msra.mxu1 %v3409_v63 }
 0xbb8   : > { %3239 = vmatprep.subr.bf16.mxu1 %v3779_v11 }
 0xbbb   : > { %3240 = vmatpush3.bf16.msra.mxu1 %v3410_v0 }
 0xc6e   : > { %v2298_v25 = vpop.f32.mrf.mxu1 }
 0xc6f   : > { %v2299_v28 = vadd.f32 %v3001_v30, %v2298_v25 }
 0xc70   : > { %v3223_v27 = vpop.f32.mrf.mxu1 }
 0xc71   : > { %v2305_v29 = vadd.f32 %v2299_v28, %v4191_v15 }
 0xc72   : > { %v2301_v31 = vpop.f32.mrf.mxu1 }
 0xc73   : > { %v2302_v32 = vadd.f32 %v3001_v30, %v2301_v31  ;;  %v2309_v33 = vsel %vm1142_vm4, %v2305_v29, 0.0 }
 0xc74   : > { %2310 = vadd.xlane.f32.xlu1 %v2309_v33  ;;  %v3224_v35 = vpop.f32.mrf.mxu1 }
 0xc75   : > { %v2306_v37 = vadd.f32 %v2302_v32, %v4193_v16  ;;  %v3405_v16 = vld [vmem:[%s4120_s7 + $0x8] sm:$0xff]  }
 0xc76   : > { %3226 = vmatpush3.bf16.msra.mxu0 %v3405_v16 }
 0xc77   : > { %v2312_v38 = vsel %vm1142_vm4, %v2306_v37, 0.0  ;;  %3227 = vmatprep.subr.bf16.mxu0 %v3779_v11  ;;  %v3011_v11 = vld [vmem:[%s1032_s13] ss:$0 sm:$0xff] }
 0xc78   : > { %2313 = vadd.xlane.f32.xlu0 %v2312_v38 }
 0xc7a   : > { %3228 = vmatpush3.bf16.msra.mxu0 %v3406_v48 }
 0xcfd   : > { %v2311_v40 = vpop.xlane.xlu1 %2310 }
 0xcfe   : > { %v2316_v41 = vmul.f32 0.03125, %v2311_v40 }
 0xd00   : > { %v2318_v42 = vsub.f32 %v2305_v29, %v2316_v41 }
 0xd01   : > { %v2314_v43 = vpop.xlane.xlu0 %2313 }
 0xd02   : > { %v2317_v44 = vmul.f32 0.03125, %v2314_v43  ;;  %v2320_v15 = vmul.f32 %v2318_v42, %v2318_v42 }
 0xd04   : > { %v2319_v45 = vsub.f32 %v2306_v37, %v2317_v44  ;;  %v2322_v46 = vsel %vm1142_vm4, %v2320_v15, 0.0 }
 0xd05   : > { %2323 = vadd.xlane.f32.xlu0 %v2322_v46  ;;  %v3017_v46 = vld [vmem:[%s1041_s12] ss:$0 sm:$0xff] }
 0xd06   : > { %v2321_v49 = vmul.f32 %v2319_v45, %v2319_v45 }
 0xd08   : > { %v2325_v50 = vsel %vm1142_vm4, %v2321_v49, 0.0 }
 0xd09   : > { %2326 = vadd.xlane.f32.xlu0 %v2325_v50  ;;  %v3018_v50 = vld [vmem:[%s1044_s23] ss:$0 sm:$0xff] }
 0xd8e   : > { %v2324_v22 = vpop.xlane.xlu0 %2323 }
 0xd8f   : > { %v2328_v23 = vmul.f32 0.03125, %v2324_v22 }
 0xd91   : > { %v2330_v51 = vadd.f32 1e-05, %v2328_v23 }
 0xd92   : > { %v2327_v52 = vpop.xlane.xlu0 %2326 }
 0xd93   : > { %3443 = vrsqrt.f32 %v2330_v51  ;;  %v2329_v53 = vmul.f32 0.03125, %v2327_v52 }
 0xd95   : > { %v2331_v54 = vadd.f32 1e-05, %v2329_v53 }
 0xd97   : > { %3445 = vrsqrt.f32 %v2331_v54 }
 0xda0   : > { %v3444_v55 = vpop.eup %3443 }
 0xda1   : > { %v2334_v26 = vmul.f32 %v3444_v55, %v2318_v42 }
 0xda3   : > { %v2342_v47 = vmul.f32 %v3005_v34, %v2334_v26 }
 0xda4   : > { %v3446_v56 = vpop.eup %3445 }
 0xda5   : > { %v2335_v39 = vmul.f32 %v3446_v56, %v2319_v45  ;;  %v2350_v59 = vadd.f32 %v3006_v57, %v2342_v47 }
 0xda7   : > { %v2343_v58 = vmul.f32 %v3005_v34, %v2335_v39 }
 0xda9   : > { %v2351_v60 = vadd.f32 %v3006_v57, %v2343_v58 }
 0xdab   : > { %v2352_v61 = vpack.c.bf16 %v2351_v60, %v2350_v59 }
 0xdad   : > { %3230 = vmatmul.mubr.msk.bf16.vlgmr.msra.gmra.mxu0 %vm1142_vm4, %v2352_v61 }
 0xe6d   : > { %v2413_v2 = vpop.f32.mrf.mxu0 }
 0xe6e   : > { %v2414_v3 = vadd.f32 %v3007_v1, %v2413_v2 }
 0xe6f   : > { %v3231_v36 = vpop.f32.mrf.mxu0 }
 0xe70   : > { %v2420_v7 = vmax.f32 %v2414_v3, 0.0 }
 0xe71   : > { %v2416_v4 = vpop.f32.mrf.mxu0 }
 0xe72   : > { %v2417_v5 = vadd.f32 %v3007_v1, %v2416_v4 }
 0xe73   : > { %v3232_v6 = vpop.f32.mrf.mxu0 }
 0xe74   : > { %v2421_v8 = vmax.f32 %v2417_v5, 0.0 }
 0xe76   : > { %v2422_v9 = vpack.c.bf16 %v2421_v8, %v2420_v7 }
 0xe78   : > { %3242 = vmatmul.mubr.msk.bf16.vlgmr.msra.gmra.mxu1 %vm2462_vm9, %v2422_v9 }
 0xf38   : > { %v2500_v10 = vpop.f32.mrf.mxu1 }
 0xf39   : > { %v2501_v12 = vadd.f32 %v3011_v11, %v2500_v10 }
 0xf3a   : > { %v3243_v13 = vpop.f32.mrf.mxu1 }
 0xf3b   : > { %v2507_v14 = vadd.f32 %v2501_v12, %v2350_v59 }
 0xf3c   : > { %v2503_v17 = vpop.f32.mrf.mxu1 }
 0xf3d   : > { %v2504_v18 = vadd.f32 %v3011_v11, %v2503_v17  ;;  %v2511_v20 = vsel %vm1142_vm4, %v2507_v14, 0.0 }
 0xf3e   : > { %2512 = vadd.xlane.f32.xlu1 %v2511_v20  ;;  %v3244_v21 = vpop.f32.mrf.mxu1 }
 0xf3f   : > { %v2508_v24 = vadd.f32 %v2504_v18, %v2351_v60 }
 0xf41   : > { %v2514_v30 = vsel %vm1142_vm4, %v2508_v24, 0.0 }
 0xf42   : > { %2515 = vadd.xlane.f32.xlu0 %v2514_v30 }
 0xfc7   : > { %v2513_v25 = vpop.xlane.xlu1 %2512 }
 0xfc8   : > { %v2517_v28 = vmul.f32 0.03125, %v2513_v25 }
 0xfca   : > { %v2519_v27 = vsub.f32 %v2507_v14, %v2517_v28 }
 0xfcb   : > { %v2516_v29 = vpop.xlane.xlu0 %2515 }
 0xfcc   : > { %v2518_v31 = vmul.f32 0.03125, %v2516_v29  ;;  %v2521_v32 = vmul.f32 %v2519_v27, %v2519_v27 }
 0xfce   : > { %v2520_v33 = vsub.f32 %v2508_v24, %v2518_v31  ;;  %v2523_v35 = vsel %vm1142_vm4, %v2521_v32, 0.0 }
 0xfcf   : > { %2524 = vadd.xlane.f32.xlu1 %v2523_v35 }
 0xfd0   : > { %v2522_v37 = vmul.f32 %v2520_v33, %v2520_v33 }
 0xfd2   : > { %v2526_v38 = vsel %vm1142_vm4, %v2522_v37, 0.0 }
 0xfd3   : > { %2527 = vadd.xlane.f32.xlu0 %v2526_v38 }
0x1058   : > { %v2525_v40 = vpop.xlane.xlu1 %2524 }
0x1059   : > { %v2529_v41 = vmul.f32 0.03125, %v2525_v40 }
0x105b   : > { %v2531_v42 = vadd.f32 1e-05, %v2529_v41 }
0x105c   : > { %v2528_v43 = vpop.xlane.xlu0 %2527 }
0x105d   : > { %3447 = vrsqrt.f32 %v2531_v42  ;;  %v2530_v44 = vmul.f32 0.03125, %v2528_v43 }
0x105f   : > { %v2532_v15 = vadd.f32 1e-05, %v2530_v44 }
0x1061   : > { %3449 = vrsqrt.f32 %v2532_v15 }
0x106a   : > { %v3448_v45 = vpop.eup %3447 }
0x106b   : > { %v2535_v49 = vmul.f32 %v3448_v45, %v2519_v27 }
0x106d   : > { %v2543_v16 = vmul.f32 %v3017_v46, %v2535_v49 }
0x106e   : > { %v3450_v48 = vpop.eup %3449 }
0x106f   : > { %v2551_v19 = vadd.f32 %v3018_v50, %v2543_v16  ;;  %v2536_v22 = vmul.f32 %v3450_v48, %v2520_v33 }
0x1071   : > { %2553 = vst.msk [vmem:[#allocation2] sm:$0xff] %vm1142_vm4, %v2551_v19  ;;  %v2544_v23 = vmul.f32 %v3017_v46, %v2536_v22  ;;  %2558 = sbr.rel (%p3019_p8) target bundleno = 4433 (0x1151), region = 144 }
0x1073   : > { %v2552_v51 = vadd.f32 %v3018_v50, %v2544_v23 }
0x1075   : > { %2554 = vst.msk [vmem:[#allocation2 + $0x8] sm:$0xff] %vm1142_vm4, %v2552_v51 }
0x1076   : > { %v3451_v52 = vld [vmem:[%s4593_s30 + $0x8] sm:$0xff]   ;;  %v3787_v53 = vmov 0.0   ;;  %v3452_v54 = vld [vmem:[%s4593_s30] sm:$0xff]   ;;  %vm3788_vm10 = vmmov 0   ;;  %v2559_v55 = vsel %vm1142_vm4, %v2551_v19, -inf  ;;  %v2566_v26 = vsel %vm1142_vm4, %v2552_v51, -inf }
0x1077   : > { %3245 = vmatprep.subr.bf16.mxu0 %v3787_v53  ;;  %3249 = vmatprep.mubr.msk.bf16.mxu0 %vm3788_vm10, %v3787_v53  ;;  %v2560_v34 = vrot.slane %v2559_v55, 4  ;;  %v2567_v56 = vrot.slane %v2566_v26, 4  ;;  %vm2590_vm11 = vcmask 1041409   ;;  %v3020_v6 = vld [vmem:[%s4594_s14] ss:$0 sm:$0xff] }
0x1078   : > { %3246 = vmatpush3.bf16.msra.mxu0 %v3451_v52 }
0x1079   : > { %3247 = vmatprep.subr.bf16.mxu0 %v3787_v53  ;;  %v2561_v39 = vmax.f32 %v2559_v55, %v2560_v34  ;;  %v2568_v47 = vmax.f32 %v2566_v26, %v2567_v56 }
0x107b   : > { %v2562_v57 = vrot.slane %v2561_v39, 2  ;;  %v2569_v58 = vrot.slane %v2568_v47, 2 }
0x107c   : > { %3248 = vmatpush3.bf16.msra.mxu0 %v3452_v54 }
0x107d   : > { %v2563_v59 = vmax.f32 %v2561_v39, %v2562_v57  ;;  %v2570_v60 = vmax.f32 %v2568_v47, %v2569_v58 }
0x107f   : > { %v2564_v61 = vrot.slane %v2563_v59, 1  ;;  %v2571_v62 = vrot.slane %v2570_v60, 1 }
0x1081   : > { %v2565_v63 = vmax.f32 %v2563_v59, %v2564_v61  ;;  %v2572_v0 = vmax.f32 %v2570_v60, %v2571_v62 }
0x1083   : > { %v2573_v1 = vpack.c.bf16 %v2565_v63, %v2565_v63  ;;  %v2574_v2 = vpack.c.bf16 %v2572_v0, %v2572_v0 }
0x1085   : > { %v2588_v36 = vunpack.c.l.b16 %v2573_v1  ;;  %v2589_v3 = vunpack.c.l.b16 %v2574_v2 }
0x1087   : > { %v2591_v4 = vsel %vm2590_vm11, %v2589_v3, %v2588_v36 }
0x1088   : > { %v2592_v5 = vpack.c.b16 %v2591_v4, %v2591_v4 }
0x108a   : > { %3250 = vmatmul.mubr.msk.bf16.vlgmr.msra.gmra.mxu0 %vm1142_vm4, %v2592_v5 }
0x114a   : > { %v2642_v7 = vpop.f32.mrf.mxu0 }
0x114b   : > { %v2643_v8 = vadd.f32 %v3020_v6, %v2642_v7 }
0x114c   : > { %v3251_v9 = vpop.f32.mrf.mxu0 }
0x114d   : > { %2648 = vst [vmem:[#allocation17] sm:$0x3] %v2643_v8 }
0x114e   : > { %v2645_v11 = vpop.f32.mrf.mxu0 }
0x1150   : > { %v3252_v10 = vpop.f32.mrf.mxu0 }
0x1151 PF: > { %s4595_s18 = sld [smem:[#allocation28_spill]]  ;;  %s3789_s1 = smov [#allocation17]  }
0x1152   : > { %s2658_s22 = sshll.u32 %s3789_s1, 4  ;;  %s2659_s22 = int_to_ptr.vmem [resolvable:$true] %s2658_s22 }
0x1153   : > { %s3671_s7 = scalar_lea.vmem %s2659_s22, 32  ;;  %p3678_p6 = scmp.lt.s32.totalorder %s2659_s22, %s2659_s22 }
0x1154   : > { %p3672_p1 = scmp.ne.s32.totalorder %s2659_s22, %s3671_s7  ;;  %p3679_p10 = scmp.lt.s32.totalorder %s3671_s7, %s3671_s7 }
0x1156   : > { %p3680_p9 = por %p3679_p10, %p3678_p6 }
0x1157   : > { %p3312_p2 = scmp.eq.s32.totalorder %s4595_s18, 1 }
0x1159   : > { %p3673_p3 = pnand %p3672_p1, %p3312_p2 }
0x115b   : > { %p3674_p7 = pneg %p3673_p3 }
0x115d   : > { %p3681_p0 = pnand %p3680_p9, %p3674_p7 }
0x115f   : > { %3684 = shalt.err (!%p3681_p0)
}
0x1160   : > { %s4596_s2 = sld [smem:[#allocation51_spill]] }
0x1166   : > { %3276 = dma.vmem_to_hbm [thread:$0]  (%p3312_p2), %s2659_s22, 32, %s4596_s2, [#allocation5]  }
0x1167   : > { %3740 = dma.done.wait (%p3312_p2), [#allocation5], 32  }
0x1168   : > { %3742 = vsyncadd (%p3312_p2), [#allocation5], 4294967264 }
0x1169 PF: > { %s4597_s28 = sld [smem:[#allocation27_spill]] }
0x116a   : > { %s4598_s2 = sld [smem:[#allocation24_spill]] }
0x116b   : > { %s4599_s25 = sld [smem:[#allocation25_spill]] }
0x116c   : > { %s4600_s26 = sld [smem:[#allocation30_spill]] }
0x116d   : > { %s4601_s27 = sld [smem:[#allocation26_spill]] }
0x116e   : > { %s4602_s3 = sld [smem:[#allocation29_spill]] }
0x116f   : > { %s43_s28 = sadd.s32 1, %s4597_s28  }
0x1170   : > { %p40_p11 = scmp.ge.s32.totalorder %s43_s28, 4  }
0x1172   :  { %42 = sbr.rel (!%p40_p11) target bundleno = 33 (0x21), region = 245 }
0x1177   :  { %2671 = vsyncpa [#allocation4], 1 }
0x1178   :  { %2673 = vsyncpa [#allocation4 + $0x1], 1 }
0x1179   :  { %2674 = vsyncpa [#allocation7], 1 }
0x117a   :  { %2675 = vsyncpa [#allocation10], 1 }
0x117b   :  { %2677 = vsyncpa [#allocation10 + $0x1], 1 }
0x117c   :  { %2678 = vsyncpa [#allocation13], 1 }
0x117d   :  { %2680 = vsyncpa [#allocation13 + $0x1], 1 }
0x117e   :  { %2681 = vsyncpa [#allocation16], 1 }
0x117f   :  { %2683 = vsyncpa [#allocation16 + $0x1], 1 }
0x1180   :  { %2684 = vsyncpa [#allocation5], 1 }
0x1181   :  { %2686 = vsyncpa [#allocation5 + $0x1], 1 }

</bundles_post_ra>
